<compile_context>
chip_gen: v5e
topology: v5e:2x2
jax: 0.10.0
libtpu: 0.0.40
codegen_flags: <defaults>
</compile_context>

<pallas_src>
import functools

import jax
import jax.numpy as jnp
import numpy as np
from jax.experimental import pallas as pl
from jax.experimental.pallas import tpu as pltpu

CLAMP_LO = 1e-7
CLAMP_HI = 1.0 - 1e-7
NEG_PAD = -1e30  # large-negative-finite (NOT -inf: avoids 0 * -inf = NaN in matmuls)


# ---------------------------------------------------------------------------
# Fused kernel.
#   per-scale:  logits = x @ W_rep[s] + b[s]        (pool+emb+emb_fc folded)
#               probs  = clamp(softmax(logits))
#   classifier: accumulate logits @ Wc[s] across scales; softmax+clamp on the
#               last scale step (pl.when).
# grid = (n_tiles, n_scales);  batch axis 'parallel', scale axis 'arbitrary'.
# ---------------------------------------------------------------------------
def _fused_kernel(x_ref, wrep_ref, b_ref, wc_ref, bc_ref,
                  probs_ref, out_ref, cls_acc):
    """
    x_ref    : (1, TN, C*HW) bf16   backbone feature maps (lane-dense layout)
    wrep_ref : (1, C*HW, Kp) bf16   pool+embedding+embedding_fc fused weight (this scale)
    b_ref    : (M, 1, Kp)    f32    fused bias, all scales (resident)
    wc_ref   : (M, Kp, Kp)   f32    classifier weight blocks, all scales (resident)
    bc_ref   : (1, Kp)       f32    classifier bias (resident)
    probs_ref: (1, TN, Kp)          clamp(softmax(out_embedding)) for this scale
    out_ref  : (TN, Kp)             clamp(softmax(classifier(cat(features))))
    cls_acc  : (TN, Kp) f32 scratch running classifier logits
    """
    s = pl.program_id(1)

    @pl.when(s == 0)
    def _():
        cls_acc[...] = jnp.zeros_like(cls_acc)

    # avgpool + embedding + embedding_fc : one bf16 MXU matmul, f32 accumulation.
    logits = jnp.dot(x_ref[0], wrep_ref[0],
                     preferred_element_type=jnp.float32) + b_ref[s]     # (TN, Kp)

    # per-scale probs: softmax + clamp.  Padded class lanes carry a -1e30 bias
    # so exp underflows to exactly 0 and they do not perturb the real classes.
    m = jnp.max(logits, axis=-1, keepdims=True)
    e = jnp.exp(logits - m)
    p = e / jnp.sum(e, axis=-1, keepdims=True)          # exact divide
    probs_ref[0] = jnp.clip(p, CLAMP_LO, CLAMP_HI)

    # classifier contribution of this scale:
    #   cat(features) @ Wc == sum_s logits_s @ Wc[s]   (padded rows of Wc are 0)
    cls_acc[...] += jnp.dot(logits, wc_ref[s], preferred_element_type=jnp.float32)

    @pl.when(s == pl.num_programs(1) - 1)
    def _():
        cl = cls_acc[...] + bc_ref[...]
        mc = jnp.max(cl, axis=-1, keepdims=True)
        ec = jnp.exp(cl - mc)
        pc = ec / jnp.sum(ec, axis=-1, keepdims=True)   # exact divide
        out_ref[...] = jnp.clip(pc, CLAMP_LO, CLAMP_HI)


# ---------------------------------------------------------------------------
# Host-side helpers
# ---------------------------------------------------------------------------
def _round_up(a, b):
    return (a + b - 1) // b * b


def _k_pad(k):
    return max(128, _round_up(k, 128))


def _choose_tile_n(n, target=256):
    """Multiple-of-8 batch tile.  target=256 is a good default (raise to 512 on
    v6e for large bags); a single-tile bag is split so the 'parallel' axis has
    >=2 tiles for v7x megacore sharding."""
    tile = min(_round_up(max(n, 1), 8), _round_up(target, 8))
    if n > tile:
        return tile
    if n > 8:
        return _round_up((n + 1) // 2, 8)
    return tile


def _vmem_budget(tile_n, chw, k_pad, m):
    x_bytes = 2 * tile_n * chw * 2          # bf16 x block, double-buffered
    w_bytes = 2 * chw * k_pad * 2           # bf16 fused-weight block, double-buffered
    resident = 2 * (m * k_pad + m * k_pad * k_pad + k_pad) * 4
    out_bytes = 2 * 2 * tile_n * k_pad * 4  # probs + out blocks, double-buffered
    scratch = tile_n * k_pad * 4
    total = x_bytes + w_bytes + resident + out_bytes + scratch
    return int(min(max(int(total * 1.5) + (2 << 20), 16 << 20), 100 << 20))


def _prepare_fused_params(params, hw, k_pad):
    """Fold AdaptiveAvgPool + embedding Linear + embedding_fc Linear into one
    weight per scale, pad K -> k_pad for lane-dense stores, pad/reshape the
    classifier.  (This prep is cheap and can be hoisted out of the serving loop.)"""
    we, be = params["we"], params["be"]          # (M, C, E), (M, 1, E)
    wf, bf = params["wf"], params["bf"]          # (M, E, K), (M, 1, K)
    wc, bc = params["wc"], params["bc"]          # (M*K, K), (1, K)
    M, C, E = we.shape
    K = wf.shape[-1]

    # Linear∘Linear fold (no nonlinearity between them; dropout == identity).
    w_comb = jnp.einsum("mce,mek->mck", we, wf)                  # (M, C, K)  f32
    b_comb = jnp.einsum("mxe,mek->mxk", be, wf) + bf             # (M, 1, K)  f32

    # Fold the HW mean into the matmul: x is flattened as c*HW + hw.
    w_rep = jnp.repeat(w_comb / hw, hw, axis=1)                  # (M, C*HW, K)
    w_rep = jnp.pad(w_rep, ((0, 0), (0, 0), (0, k_pad - K))).astype(jnp.bfloat16)

    # Padded class lanes get a huge negative bias -> softmax weight exactly 0.
    b_comb = jnp.pad(b_comb, ((0, 0), (0, 0), (0, k_pad - K)),
                     constant_values=NEG_PAD).astype(jnp.float32)

    wc_p = wc.reshape(M, K, K)
    wc_p = jnp.pad(wc_p, ((0, 0), (0, k_pad - K), (0, k_pad - K))).astype(jnp.float32)
    bc_p = jnp.pad(bc, ((0, 0), (0, k_pad - K)),
                   constant_values=NEG_PAD).astype(jnp.float32)
    return w_rep, b_comb, wc_p, bc_p


def _run_fused(x_flat, w_rep, b_comb, wc_p, bc_p, n_valid, k_valid):
    M, N, CHW = x_flat.shape
    K_pad = w_rep.shape[-1]
    tile_n = _choose_tile_n(N)
    n_pad = _round_up(N, tile_n)
    if n_pad != N:   # pad with zero rows (safe: softmax of the bias, sliced off)
        x_flat = jnp.pad(x_flat, ((0, 0), (0, n_pad - N), (0, 0)))
    n_tiles = n_pad // tile_n

    flops = int(M * n_pad * (2 * CHW * K_pad + 2 * K_pad * K_pad))
    transcendentals = int(M * n_pad * K_pad + n_pad * K_pad)
    bytes_accessed = int(x_flat.size * 2 + n_tiles * w_rep.size * 2
                         + (b_comb.size + wc_p.size + bc_p.size) * 4
                         + (M * n_pad * K_pad + n_pad * K_pad) * 4)

    probs, out_fcn = pl.pallas_call(
        _fused_kernel,
        out_shape=(jax.ShapeDtypeStruct((M, n_pad, K_pad), jnp.float32),
                   jax.ShapeDtypeStruct((n_pad, K_pad), jnp.float32)),
        grid=(n_tiles, M),
        in_specs=[
            # streamed, lane-dense
            pl.BlockSpec((1, tile_n, CHW), lambda n, s: (s, n, 0)),
            pl.BlockSpec((1, CHW, K_pad), lambda n, s: (s, 0, 0)),
            # resident small weights (constant index maps -> copied once)
            pl.BlockSpec((M, 1, K_pad), lambda n, s: (0, 0, 0)),
            pl.BlockSpec((M, K_pad, K_pad), lambda n, s: (0, 0, 0)),
            pl.BlockSpec((1, K_pad), lambda n, s: (0, 0)),
        ],
        out_specs=(pl.BlockSpec((1, tile_n, K_pad), lambda n, s: (s, n, 0)),
                   pl.BlockSpec((tile_n, K_pad), lambda n, s: (n, 0))),
        scratch_shapes=[pltpu.VMEM((tile_n, K_pad), jnp.float32)],
        compiler_params=pltpu.CompilerParams(
            dimension_semantics=("parallel", "arbitrary"),
            vmem_limit_bytes=_vmem_budget(tile_n, CHW, K_pad, M)),
        cost_estimate=pl.CostEstimate(flops=flops,
                                      transcendentals=transcendentals,
                                      bytes_accessed=bytes_accessed),
    )(x_flat, w_rep, b_comb, wc_p, bc_p)

    return out_fcn[:n_valid, :k_valid], probs[:, :n_valid, :k_valid]


def multi_scale_combine_probs_forward(x, params, idx_scale=0, mode_eval="multi_scale"):
    """JAX/Pallas port of Multi_Scale_combine_probs.forward.

    x (multi_scale) : (M, N, C, H, W) pre-avgpool backbone feature maps.
    x (single_scale): (N, C, H, W).
    Returns (output_fcn, probs) like the PyTorch module.
    """
    K = params["wf"].shape[-1]
    K_pad = _k_pad(K)

    if mode_eval == "multi_scale":
        M, N, C, H, W = x.shape
        fused = _prepare_fused_params(params, H * W, K_pad)
        x_flat = x.reshape(M, N, C * H * W).astype(jnp.bfloat16)  # free reshape
        out_fcn, probs = _run_fused(x_flat, *fused, n_valid=N, k_valid=K)
        return out_fcn, [probs[i] for i in range(M)]
    elif mode_eval == "single_scale":
        N, C, H, W = x.shape
        w_rep, b_comb, wc_p, bc_p = _prepare_fused_params(params, H * W, K_pad)
        sl = lambda a: a[idx_scale:idx_scale + 1]
        x_flat = x.reshape(1, N, C * H * W).astype(jnp.bfloat16)
        _, probs = _run_fused(x_flat, sl(w_rep), sl(b_comb), sl(wc_p), bc_p,
                              n_valid=N, k_valid=K)
        return probs[0], []
    else:
        raise ValueError(mode_eval)


# ---------------------------------------------------------------------------
# Deterministic parameter init (PyTorch nn.Linear default: U(-1/sqrt(fan_in), ..))
# ---------------------------------------------------------------------------
def init_params(key, n_scales, fc_feat_in, E, n_classes):
    ks = jax.random.split(key, 6)

    def lin(k, fan_in, shape):
        bound = 1.0 / np.sqrt(fan_in)
        return jax.random.uniform(k, shape, jnp.float32, -bound, bound)

    return {
        # embeddings[i]: Linear(fc_feat_in -> E), stored transposed (C, E)
        "we": lin(ks[0], fc_feat_in, (n_scales, fc_feat_in, E)),
        "be": lin(ks[1], fc_feat_in, (n_scales, 1, E)),
        # embeddings_fc[i]: Linear(E -> K), stored transposed (E, K)
        "wf": lin(ks[2], E, (n_scales, E, n_classes)),
        "bf": lin(ks[3], E, (n_scales, 1, n_classes)),
        # classifier: Linear(K * M -> K), stored transposed (M*K, K)
        "wc": lin(ks[4], n_classes * n_scales, (n_scales * n_classes, n_classes)),
        "bc": lin(ks[5], n_classes * n_scales, (1, n_classes)),
    }


# ---------------------------------------------------------------------------
# Pure-JAX reference (un-fused, un-padded, f32 math, exact softmax)
# ---------------------------------------------------------------------------
def reference_forward(x, params):
    x = x.astype(jnp.float32)
    M, N, C, H, W = x.shape
    feats, probs = [], []
    for i in range(M):
        pooled = jnp.mean(x[i].reshape(N, C, H * W), axis=-1)        # (N, C)
        emb = pooled @ params["we"][i] + params["be"][i]
        logits = emb @ params["wf"][i] + params["bf"][i]
        feats.append(logits)
        probs.append(jnp.clip(jax.nn.softmax(logits, axis=-1), CLAMP_LO, CLAMP_HI))
    all_inst = jnp.concatenate(feats, axis=1)
    out = jnp.clip(jax.nn.softmax(all_inst @ params["wc"] + params["bc"], axis=-1),
                   CLAMP_LO, CLAMP_HI)
    return out, probs


if __name__ == "__main__":
    # resnet34-flavoured but small: EMBEDDING_bool=True -> E=128, K=N_CLASSES
    M_SCALES = 2          # len(MAGNIFICATION)
    N_BATCH = 8           # number of patches per scale
    FC_FEAT_IN = 256      # backbone feature channels (scaled-down fc_feat_in)
    E = 128
    N_CLASSES = 4
    H = W = 4             # spatial extent of the final backbone feature map

    key = jax.random.PRNGKey(0)
    kx, kp = jax.random.split(key)
    x = jax.random.normal(kx, (M_SCALES, N_BATCH, FC_FEAT_IN, H, W), jnp.float32)
    # backbone feature maps are consumed in bf16 (halves the dominant HBM DMA);
    # kernel + reference both see the same bf16-quantized feature maps.
    x = x.astype(jnp.bfloat16)
    params = init_params(kp, M_SCALES, FC_FEAT_IN, E, N_CLASSES)

    fwd = jax.jit(functools.partial(multi_scale_combine_probs_forward,
                                    mode_eval="multi_scale"))
    output_fcn, probs = fwd(x, params)
    jax.block_until_ready(output_fcn)
    for p in probs:
        jax.block_until_ready(p)

    # Correctness check against the plain-JAX f32 reference.
    # Softmax reciprocals are exact now; the remaining discrepancy is the bf16
    # quantization of the fused pool+Linear weight fed to the MXU (~1e-4 level),
    # so rtol=2e-3 gives a comfortable margin.
    ref_out, ref_probs = reference_forward(x, params)
    np.testing.assert_allclose(np.asarray(output_fcn), np.asarray(ref_out),
                               rtol=2e-3, atol=2e-6)
    for p, rp in zip(probs, ref_probs):
        np.testing.assert_allclose(np.asarray(p), np.asarray(rp),
                                   rtol=2e-3, atol=2e-6)

    # single_scale mode smoke test
    out_single, empty = multi_scale_combine_probs_forward(
        x[1], params, idx_scale=1, mode_eval="single_scale")
    jax.block_until_ready(out_single)
    np.testing.assert_allclose(np.asarray(out_single), np.asarray(ref_probs[1]),
                               rtol=2e-3, atol=2e-6)
    assert empty == []

    print("KERNEL_OK")
</pallas_src>

<mosaic_0001>
module attributes {stable_mosaic.version = 11 : i64} {
  func.func @_fused_kernel(%arg0: i32, %arg1: i32, %arg2: memref<1x8x4096xbf16, #tpu.memory_space<vmem>>, %arg3: memref<1x4096x128xbf16, #tpu.memory_space<vmem>>, %arg4: memref<2x1x128xf32, #tpu.memory_space<vmem>>, %arg5: memref<2x128x128xf32, #tpu.memory_space<vmem>>, %arg6: memref<1x128xf32, #tpu.memory_space<vmem>>, %arg7: memref<1x8x128xf32, #tpu.memory_space<vmem>>, %arg8: memref<8x128xf32, #tpu.memory_space<vmem>>, %arg9: memref<8x128xf32, #tpu.memory_space<vmem>>) attributes {dimension_semantics = [#tpu.dimension_semantics<parallel>, #tpu.dimension_semantics<arbitrary>], iteration_bounds = array<i64: 1, 2>, scalar_prefetch = 0 : i64, scratch_operands = 1 : i64, tpu.core_type = #tpu.core_type<tc>, window_params = [{transform_indices = @transform_0, window_bounds = array<i64: 1, 8, 4096>}, {transform_indices = @transform_1, window_bounds = array<i64: 1, 4096, 128>}, {pipeline_mode = #tpu.pipeline_mode<synchronous>, transform_indices = @transform_2, window_bounds = array<i64: 2, 1, 128>}, {pipeline_mode = #tpu.pipeline_mode<synchronous>, transform_indices = @transform_3, window_bounds = array<i64: 2, 128, 128>}, {pipeline_mode = #tpu.pipeline_mode<synchronous>, transform_indices = @transform_4, window_bounds = array<i64: 1, 128>}, {transform_indices = @transform_5, window_bounds = array<i64: 1, 8, 128>}, {transform_indices = @transform_6, window_bounds = array<i64: 8, 128>}]} {
    %c0_i32 = arith.constant 0 : i32
    %0 = arith.cmpi eq, %arg1, %c0_i32 : i32
    %1 = arith.extui %0 : i1 to i32
    %c0_i32_0 = arith.constant 0 : i32
    %2 = arith.cmpi ne, %1, %c0_i32_0 : i32
    scf.if %2 {
      %cst_23 = arith.constant 0.000000e+00 : f32
      %39 = vector.broadcast %cst_23 : f32 to vector<8x128xf32>
      %c0_24 = arith.constant 0 : index
      %c0_25 = arith.constant 0 : index
      %40 = vector.load %arg9[%c0_24, %c0_25] : memref<8x128xf32, #tpu.memory_space<vmem>>, vector<8x128xf32>
      tpu.vector_store %arg9[%c0_24, %c0_25], %39 {strides = array<i32>} : memref<8x128xf32, #tpu.memory_space<vmem>>, vector<8x128xf32>,
    } else {
    }
    %c0 = arith.constant 0 : index
    %c0_1 = arith.constant 0 : index
    %c0_2 = arith.constant 0 : index
    %3 = vector.load %arg2[%c0, %c0_1, %c0_2] : memref<1x8x4096xbf16, #tpu.memory_space<vmem>>, vector<1x8x4096xbf16>
    %4 = vector.shape_cast %3 : vector<1x8x4096xbf16> to vector<8x4096xbf16>
    %c0_3 = arith.constant 0 : index
    %c0_4 = arith.constant 0 : index
    %c0_5 = arith.constant 0 : index
    %5 = vector.load %arg3[%c0_3, %c0_4, %c0_5] : memref<1x4096x128xbf16, #tpu.memory_space<vmem>>, vector<1x4096x128xbf16>
    %6 = vector.shape_cast %5 : vector<1x4096x128xbf16> to vector<4096x128xbf16>
    %cst = arith.constant dense<0.000000e+00> : vector<8x128xf32>
    %7 = tpu.matmul %4, %6, %cst {dimension_numbers = #tpu.dot_dimension_numbers<[1], [0], [0], [1], [0, 0, 1, 1], [], []>} : vector<8x4096xbf16>, vector<4096x128xbf16>, vector<8x128xf32> -> vector<8x128xf32>
    %8 = arith.index_cast %arg1 : i32 to index
    %c0_6 = arith.constant 0 : index
    %c0_7 = arith.constant 0 : index
    %9 = vector.load %arg4[%8, %c0_6, %c0_7] : memref<2x1x128xf32, #tpu.memory_space<vmem>>, vector<1x1x128xf32>
    %10 = vector.shape_cast %9 : vector<1x1x128xf32> to vector<1x128xf32>
    %11 = vector.broadcast %10 : vector<1x128xf32> to vector<8x128xf32>
    %12 = arith.addf %7, %11 : vector<8x128xf32>
    %cst_8 = arith.constant dense<0xFF800000> : vector<8xf32>
    %13 = vector.multi_reduction <maximumf>, %12, %cst_8 [1] : vector<8x128xf32> to vector<8xf32>
    %14 = vector.shape_cast %13 : vector<8xf32> to vector<8x1xf32>
    %15 = vector.broadcast %14 : vector<8x1xf32> to vector<8x128xf32>
    %16 = arith.subf %12, %15 : vector<8x128xf32>
    %17 = math.exp %16 : vector<8x128xf32>
    %cst_9 = arith.constant dense<0.000000e+00> : vector<8xf32>
    %18 = vector.multi_reduction <add>, %17, %cst_9 [1] : vector<8x128xf32> to vector<8xf32>
    %19 = vector.shape_cast %18 : vector<8xf32> to vector<8x1xf32>
    %20 = vector.broadcast %19 : vector<8x1xf32> to vector<8x128xf32>
    %21 = arith.divf %17, %20 : vector<8x128xf32>
    %cst_10 = arith.constant 1.000000e-07 : f32
    %cst_11 = arith.constant 0.99999988 : f32
    %22 = vector.broadcast %cst_10 : f32 to vector<8x128xf32>
    %23 = arith.maximumf %22, %21 : vector<8x128xf32>
    %24 = vector.broadcast %cst_11 : f32 to vector<8x128xf32>
    %25 = arith.minimumf %24, %23 : vector<8x128xf32>
    %c0_12 = arith.constant 0 : index
    %c0_13 = arith.constant 0 : index
    %c0_14 = arith.constant 0 : index
    %26 = vector.load %arg7[%c0_12, %c0_13, %c0_14] : memref<1x8x128xf32, #tpu.memory_space<vmem>>, vector<1x8x128xf32>
    %27 = vector.shape_cast %26 : vector<1x8x128xf32> to vector<8x128xf32>
    %28 = vector.shape_cast %25 : vector<8x128xf32> to vector<1x8x128xf32>
    tpu.vector_store %arg7[%c0_12, %c0_13, %c0_14], %28 {strides = array<i32>} : memref<1x8x128xf32, #tpu.memory_space<vmem>>, vector<1x8x128xf32>,
    %c0_15 = arith.constant 0 : index
    %c0_16 = arith.constant 0 : index
    %29 = vector.load %arg9[%c0_15, %c0_16] : memref<8x128xf32, #tpu.memory_space<vmem>>, vector<8x128xf32>
    %30 = arith.index_cast %arg1 : i32 to index
    %c0_17 = arith.constant 0 : index
    %c0_18 = arith.constant 0 : index
    %31 = vector.load %arg5[%30, %c0_17, %c0_18] : memref<2x128x128xf32, #tpu.memory_space<vmem>>, vector<1x128x128xf32>
    %32 = vector.shape_cast %31 : vector<1x128x128xf32> to vector<128x128xf32>
    %cst_19 = arith.constant dense<0.000000e+00> : vector<8x128xf32>
    %33 = tpu.matmul %12, %32, %cst_19 {dimension_numbers = #tpu.dot_dimension_numbers<[1], [0], [0], [1], [0, 0, 1, 1], [], []>} : vector<8x128xf32>, vector<128x128xf32>, vector<8x128xf32> -> vector<8x128xf32>
    %34 = arith.addf %29, %33 : vector<8x128xf32>
    %c0_20 = arith.constant 0 : index
    %c0_21 = arith.constant 0 : index
    %35 = vector.load %arg9[%c0_20, %c0_21] : memref<8x128xf32, #tpu.memory_space<vmem>>, vector<8x128xf32>
    tpu.vector_store %arg9[%c0_20, %c0_21], %34 {strides = array<i32>} : memref<8x128xf32, #tpu.memory_space<vmem>>, vector<8x128xf32>,
    %c1_i32 = arith.constant 1 : i32
    %36 = arith.cmpi eq, %arg1, %c1_i32 : i32
    %37 = arith.extui %36 : i1 to i32
    %c0_i32_22 = arith.constant 0 : i32
    %38 = arith.cmpi ne, %37, %c0_i32_22 : i32
    scf.if %38 {
      %c0_23 = arith.constant 0 : index
      %c0_24 = arith.constant 0 : index
      %39 = vector.load %arg9[%c0_23, %c0_24] : memref<8x128xf32, #tpu.memory_space<vmem>>, vector<8x128xf32>
      %c0_25 = arith.constant 0 : index
      %c0_26 = arith.constant 0 : index
      %40 = vector.load %arg6[%c0_25, %c0_26] : memref<1x128xf32, #tpu.memory_space<vmem>>, vector<1x128xf32>
      %41 = vector.broadcast %40 : vector<1x128xf32> to vector<8x128xf32>
      %42 = arith.addf %39, %41 : vector<8x128xf32>
      %cst_27 = arith.constant dense<0xFF800000> : vector<8xf32>
      %43 = vector.multi_reduction <maximumf>, %42, %cst_27 [1] : vector<8x128xf32> to vector<8xf32>
      %44 = vector.shape_cast %43 : vector<8xf32> to vector<8x1xf32>
      %45 = vector.broadcast %44 : vector<8x1xf32> to vector<8x128xf32>
      %46 = arith.subf %42, %45 : vector<8x128xf32>
      %47 = math.exp %46 : vector<8x128xf32>
      %cst_28 = arith.constant dense<0.000000e+00> : vector<8xf32>
      %48 = vector.multi_reduction <add>, %47, %cst_28 [1] : vector<8x128xf32> to vector<8xf32>
      %49 = vector.shape_cast %48 : vector<8xf32> to vector<8x1xf32>
      %50 = vector.broadcast %49 : vector<8x1xf32> to vector<8x128xf32>
      %51 = arith.divf %47, %50 : vector<8x128xf32>
      %cst_29 = arith.constant 1.000000e-07 : f32
      %cst_30 = arith.constant 0.99999988 : f32
      %52 = vector.broadcast %cst_29 : f32 to vector<8x128xf32>
      %53 = arith.maximumf %52, %51 : vector<8x128xf32>
      %54 = vector.broadcast %cst_30 : f32 to vector<8x128xf32>
      %55 = arith.minimumf %54, %53 : vector<8x128xf32>
      %c0_31 = arith.constant 0 : index
      %c0_32 = arith.constant 0 : index
      %56 = vector.load %arg8[%c0_31, %c0_32] : memref<8x128xf32, #tpu.memory_space<vmem>>, vector<8x128xf32>
      tpu.vector_store %arg8[%c0_31, %c0_32], %55 {strides = array<i32>} : memref<8x128xf32, #tpu.memory_space<vmem>>, vector<8x128xf32>,
    } else {
    }
    return
  }
  func.func @transform_0(%arg0: i32, %arg1: i32) -> (i32, i32, i32) {
    %c0_i32 = arith.constant 0 : i32
    %c0_i32_0 = arith.constant 0 : i32
    return %arg1, %arg0, %c0_i32 : i32, i32, i32
  }
  func.func @transform_1(%arg0: i32, %arg1: i32) -> (i32, i32, i32) {
    %c0_i32 = arith.constant 0 : i32
    %c0_i32_0 = arith.constant 0 : i32
    %c0_i32_1 = arith.constant 0 : i32
    return %arg1, %c0_i32, %c0_i32_0 : i32, i32, i32
  }
  func.func @transform_2(%arg0: i32, %arg1: i32) -> (i32, i32, i32) {
    %c0_i32 = arith.constant 0 : i32
    %c0_i32_0 = arith.constant 0 : i32
    %c0_i32_1 = arith.constant 0 : i32
    %c0_i32_2 = arith.constant 0 : i32
    return %c0_i32, %c0_i32_0, %c0_i32_1 : i32, i32, i32
  }
  func.func @transform_3(%arg0: i32, %arg1: i32) -> (i32, i32, i32) {
    %c0_i32 = arith.constant 0 : i32
    %c0_i32_0 = arith.constant 0 : i32
    %c0_i32_1 = arith.constant 0 : i32
    %c0_i32_2 = arith.constant 0 : i32
    return %c0_i32, %c0_i32_0, %c0_i32_1 : i32, i32, i32
  }
  func.func @transform_4(%arg0: i32, %arg1: i32) -> (i32, i32) {
    %c0_i32 = arith.constant 0 : i32
    %c0_i32_0 = arith.constant 0 : i32
    %c0_i32_1 = arith.constant 0 : i32
    return %c0_i32, %c0_i32_0 : i32, i32
  }
  func.func @transform_5(%arg0: i32, %arg1: i32) -> (i32, i32, i32) {
    %c0_i32 = arith.constant 0 : i32
    %c0_i32_0 = arith.constant 0 : i32
    return %arg1, %arg0, %c0_i32 : i32, i32, i32
  }
  func.func @transform_6(%arg0: i32, %arg1: i32) -> (i32, i32) {
    %c0_i32 = arith.constant 0 : i32
    %c0_i32_0 = arith.constant 0 : i32
    return %arg0, %c0_i32 : i32, i32
  }
}

</mosaic_0001>

<bundles_post_ra>
// kernel: multi_scale_combine_probs_forward.1
= control target key start
LH: loop header
LB: loop body
LE: loop exit
PB: predicated region body
PF: predicated region fallthrough
CT: control target
= control target key end

     0   :  { %s4535_s21 = smov 0   ;;  %s4537_s22 = smov 0   ;;  %s4899_s0 = inlined_call_operand.vmem [shape: bf16[2,8,4096], index: 0, kind: input, shape index: {}]   ;;  %s4900_s1 = inlined_call_operand.vmem [shape: bf16[2,4096,128], index: 1, kind: input, shape index: {}]   ;;  %s4901_s2 = inlined_call_operand.vmem [shape: f32[2,1,128], index: 2, kind: input, shape index: {}]   ;;  %s4902_s3 = inlined_call_operand.vmem [shape: f32[2,128,128], index: 3, kind: input, shape index: {}]   ;;  %s4903_s4 = inlined_call_operand.vmem [shape: f32[1,128], index: 4, kind: input, shape index: {}]   ;;  %s4904_s5 = inlined_call_operand.vmem [shape: f32[2,8,128], index: 5, kind: output, shape index: {0}]   ;;  %s4905_s6 = inlined_call_operand.vmem [shape: f32[8,128], index: 6, kind: output, shape index: {1}]  }
   0x1   :  { %s4539_s23 = smov 0  }
   0x2 LB: > { %s26_s24 = sadd.s32 1, %s4493_s22  ;;  %p3146_p0 = scmp.ge.s32.totalorder %s4497_s23, 1  ;;  %s4497_s23 = sphi %s4539_s23, %s17_s23   ;;  %s4493_s22 = sphi %s4537_s22, %s4907_s22   ;;  %s4489_s21 = sphi %s4535_s21, %s4906_s21  }
   0x3   : > { %p27_p1 = scmp.ge.s32.totalorder %s26_s24, 2  ;;  %p245_p2 = scmp.lt.s32.totalorder %s4497_s23, 3 }
   0x5   : > { %s4909_s24 = smov (%p27_p1, %s26_s24), 0  ;;  %p246_p3 = pnand %p3146_p0, %p245_p2 }
   0x6   : > { %p290_p4 = scmp.lt.s32.totalorder (!%p246_p3), %s4489_s21, 1  ;;  %p3152_p5 = scmp.ne.s32.totalorder (!%p246_p3), %s4489_s21, 0 }
   0x7   : > { %249 = sbr.rel (%p246_p3) target bundleno = 952 (0x3b8), region = 40 }
   0xc   : > { %s291_s25 = scalar_select %p290_p4, %s4489_s21, 1 }
   0xd   : > { %318 = sbr.rel (%p3152_p5) target bundleno = 20 (0x14), region = 44 }
   0xe   : > { %s4182_s26 = sshll.u32 %s291_s25, 7  ;;  %s4183_s27 = sshll.u32 %s291_s25, 11 }
   0xf   : > { %s4560_s30 = scalar_lea.vmem %s4899_s0, %s4182_s26  ;;  %s4565_s9 = scalar_lea.vmem %s4900_s1, %s4183_s27 }
  0x10   : > { %s3151_s10 = sshll.u32 %s291_s25, 3 }
  0x11   : > { %s4570_s13 = scalar_lea.vmem %s4904_s5, %s3151_s10 }
  0x12   : > { %v4499_v0 = vmov 0.0  }
  0x13   : > { %319 = vst [vmem:[#allocation2] sm:$0xff] %v4499_v0 }
  0x14 PF: > { %v4191_v1 = vld [vmem:[%s4565_s9 + $0x38] sm:$0xff]  ;;  %v4190_v5 = vld [vmem:[%s4565_s9 + $0x30] sm:$0xff]  ;;  %v4189_v9 = vld [vmem:[%s4565_s9 + $0x28] sm:$0xff]  ;;  %s848_s16 = scalar_lea.vmem %s4901_s2, %s4489_s21  ;;  %s4177_s19 = sshll.u32 %s4489_s21, 7 }
  0x15   : > { %v4199_v2 = vld [vmem:[%s4565_s9 + $0x78] sm:$0xff]  ;;  %2501 = vmatpush.bf16.msra.mxu0 %v4191_v1  ;;  %v4198_v6 = vld [vmem:[%s4565_s9 + $0x70] sm:$0xff]  ;;  %v4197_v10 = vld [vmem:[%s4565_s9 + $0x68] sm:$0xff]  ;;  %s4864_s26 = scalar_lea.vmem %s4902_s3, %s4177_s19  ;;  %p4178_p6 = scmp.ne.s32.totalorder %s4489_s21, 1 }
  0x16   : > { %v4207_v3 = vld [vmem:[%s4565_s9 + $0xb8] sm:$0xff]  ;;  %2514 = vmatpush.bf16.msra.mxu1 %v4199_v2  ;;  %v4206_v7 = vld [vmem:[%s4565_s9 + $0xb0] sm:$0xff]  ;;  %v4205_v11 = vld [vmem:[%s4565_s9 + $0xa8] sm:$0xff] }
  0x17   : > { %v4215_v4 = vld [vmem:[%s4565_s9 + $0xf8] sm:$0xff]  ;;  %2527 = vmatpush.bf16.msra.mxu2 %v4207_v3  ;;  %v4214_v8 = vld [vmem:[%s4565_s9 + $0xf0] sm:$0xff]  ;;  %v4213_v12 = vld [vmem:[%s4565_s9 + $0xe8] sm:$0xff] }
  0x18   : > { %2540 = vmatpush.bf16.msra.mxu3 %v4215_v4  ;;  %v4188_v13 = vld [vmem:[%s4565_s9 + $0x20] sm:$0xff]  ;;  %v4187_v17 = vld [vmem:[%s4565_s9 + $0x18] sm:$0xff]  ;;  %v4186_v21 = vld [vmem:[%s4565_s9 + $0x10] sm:$0xff] }
  0x19   : > { %2502 = vmatpush.bf16.msra.mxu0 %v4190_v5  ;;  %v4196_v14 = vld [vmem:[%s4565_s9 + $0x60] sm:$0xff]  ;;  %v4195_v18 = vld [vmem:[%s4565_s9 + $0x58] sm:$0xff]  ;;  %v4194_v22 = vld [vmem:[%s4565_s9 + $0x50] sm:$0xff] }
  0x1a   : > { %2515 = vmatpush.bf16.msra.mxu1 %v4198_v6  ;;  %v4204_v15 = vld [vmem:[%s4565_s9 + $0xa0] sm:$0xff]  ;;  %v4203_v19 = vld [vmem:[%s4565_s9 + $0x98] sm:$0xff]  ;;  %v4202_v23 = vld [vmem:[%s4565_s9 + $0x90] sm:$0xff] }
  0x1b   : > { %2528 = vmatpush.bf16.msra.mxu2 %v4206_v7  ;;  %v4212_v16 = vld [vmem:[%s4565_s9 + $0xe0] sm:$0xff]  ;;  %v4211_v20 = vld [vmem:[%s4565_s9 + $0xd8] sm:$0xff]  ;;  %v4210_v24 = vld [vmem:[%s4565_s9 + $0xd0] sm:$0xff] }
  0x1c   : > { %2541 = vmatpush.bf16.msra.mxu3 %v4214_v8  ;;  %v4185_v25 = vld [vmem:[%s4565_s9 + $0x8] sm:$0xff]  ;;  %v320_v30 = vld [vmem:[%s4560_s30] sm:$0xff]  ;;  %v4223_v39 = vld [vmem:[%s4565_s9 + $0x138] sm:$0xff] }
  0x1d   : > { %2503 = vmatpush.bf16.msra.mxu0 %v4189_v9  ;;  %v4193_v26 = vld [vmem:[%s4565_s9 + $0x48] sm:$0xff]  ;;  %v4184_v31 = vld [vmem:[%s4565_s9] sm:$0xff]  ;;  %v869_v34 = vunpack.c.l.b16 %v320_v30  ;;  %v870_v38 = vunpack.c.h.b16 %v320_v30  ;;  %v4231_v40 = vld [vmem:[%s4565_s9 + $0x178] sm:$0xff] }
  0x1e   : > { %2516 = vmatpush.bf16.msra.mxu1 %v4197_v10  ;;  %v4201_v27 = vld [vmem:[%s4565_s9 + $0x88] sm:$0xff]  ;;  %v4192_v32 = vld [vmem:[%s4565_s9 + $0x40] sm:$0xff]  ;;  %v4239_v41 = vld [vmem:[%s4565_s9 + $0x1b8] sm:$0xff] }
  0x1f   : > { %2529 = vmatpush.bf16.msra.mxu2 %v4205_v11  ;;  %v4209_v28 = vld [vmem:[%s4565_s9 + $0xc8] sm:$0xff]  ;;  %v4200_v35 = vld [vmem:[%s4565_s9 + $0x80] sm:$0xff]  ;;  %v4247_v42 = vld [vmem:[%s4565_s9 + $0x1f8] sm:$0xff]  ;;  %v901_v44 = vpack.c.b16 %v869_v34, %v869_v34  ;;  %v902_v46 = vpack.c.b16 %v870_v38, %v870_v38 }
  0x20   : > { %2542 = vmatpush.bf16.msra.mxu3 %v4213_v12  ;;  %v321_v29 = vld [vmem:[%s4560_s30 + $0x8] sm:$0xff]  ;;  %v4208_v36 = vld [vmem:[%s4565_s9 + $0xc0] sm:$0xff]  ;;  %v4222_v47 = vld [vmem:[%s4565_s9 + $0x130] sm:$0xff] }
  0x21   : > { %2504 = vmatpush.bf16.msra.mxu0 %v4188_v13  ;;  %v871_v33 = vunpack.c.l.b16 %v321_v29  ;;  %v872_v37 = vunpack.c.h.b16 %v321_v29  ;;  %v4230_v48 = vld [vmem:[%s4565_s9 + $0x170] sm:$0xff]  ;;  %v4221_v51 = vld [vmem:[%s4565_s9 + $0x128] sm:$0xff]  ;;  %v4220_v55 = vld [vmem:[%s4565_s9 + $0x120] sm:$0xff] }
  0x22   : > { %2517 = vmatpush.bf16.msra.mxu1 %v4196_v14  ;;  %v4238_v49 = vld [vmem:[%s4565_s9 + $0x1b0] sm:$0xff]  ;;  %v4229_v52 = vld [vmem:[%s4565_s9 + $0x168] sm:$0xff]  ;;  %v4228_v56 = vld [vmem:[%s4565_s9 + $0x160] sm:$0xff] }
  0x23   : > { %2530 = vmatpush.bf16.msra.mxu2 %v4204_v15  ;;  %v903_v43 = vpack.c.b16 %v871_v33, %v871_v33  ;;  %v904_v45 = vpack.c.b16 %v872_v37, %v872_v37  ;;  %v4246_v50 = vld [vmem:[%s4565_s9 + $0x1f0] sm:$0xff]  ;;  %v4237_v53 = vld [vmem:[%s4565_s9 + $0x1a8] sm:$0xff]  ;;  %v4236_v57 = vld [vmem:[%s4565_s9 + $0x1a0] sm:$0xff] }
  0x24   : > { %2543 = vmatpush.bf16.msra.mxu3 %v4212_v16  ;;  %v4245_v54 = vld [vmem:[%s4565_s9 + $0x1e8] sm:$0xff]  ;;  %v4244_v58 = vld [vmem:[%s4565_s9 + $0x1e0] sm:$0xff]  ;;  %v4219_v59 = vld [vmem:[%s4565_s9 + $0x118] sm:$0xff] }
  0x25   : > { %2505 = vmatpush.bf16.msra.mxu0 %v4187_v17  ;;  %v4227_v60 = vld [vmem:[%s4565_s9 + $0x158] sm:$0xff]  ;;  %v4218_v63 = vld [vmem:[%s4565_s9 + $0x110] sm:$0xff]  ;;  %v4217_v3 = vld [vmem:[%s4565_s9 + $0x108] sm:$0xff] }
  0x26   : > { %2518 = vmatpush.bf16.msra.mxu1 %v4195_v18  ;;  %v4235_v61 = vld [vmem:[%s4565_s9 + $0x198] sm:$0xff]  ;;  %v4226_v0 = vld [vmem:[%s4565_s9 + $0x150] sm:$0xff]  ;;  %v4225_v4 = vld [vmem:[%s4565_s9 + $0x148] sm:$0xff] }
  0x27   : > { %2531 = vmatpush.bf16.msra.mxu2 %v4203_v19  ;;  %v4243_v62 = vld [vmem:[%s4565_s9 + $0x1d8] sm:$0xff]  ;;  %v4234_v1 = vld [vmem:[%s4565_s9 + $0x190] sm:$0xff]  ;;  %v4233_v5 = vld [vmem:[%s4565_s9 + $0x188] sm:$0xff] }
  0x28   : > { %2544 = vmatpush.bf16.msra.mxu3 %v4211_v20  ;;  %v4242_v2 = vld [vmem:[%s4565_s9 + $0x1d0] sm:$0xff]  ;;  %v4241_v6 = vld [vmem:[%s4565_s9 + $0x1c8] sm:$0xff]  ;;  %v323_v7 = vld [vmem:[%s4560_s30 + $0x18] sm:$0xff] }
  0x29   : > { %2506 = vmatpush.bf16.msra.mxu0 %v4186_v21  ;;  %v322_v8 = vld [vmem:[%s4560_s30 + $0x10] sm:$0xff]  ;;  %v4216_v9 = vld [vmem:[%s4565_s9 + $0x100] sm:$0xff]  ;;  %v875_v11 = vunpack.c.l.b16 %v323_v7  ;;  %v876_v15 = vunpack.c.h.b16 %v323_v7  ;;  %v4255_v17 = vld [vmem:[%s4565_s9 + $0x238] sm:$0xff] }
  0x2a   : > { %2519 = vmatpush.bf16.msra.mxu1 %v4194_v22  ;;  %v4224_v10 = vld [vmem:[%s4565_s9 + $0x140] sm:$0xff]  ;;  %v873_v12 = vunpack.c.l.b16 %v322_v8  ;;  %v874_v16 = vunpack.c.h.b16 %v322_v8  ;;  %v4263_v18 = vld [vmem:[%s4565_s9 + $0x278] sm:$0xff]  ;;  %v4253_v29 = vld [vmem:[%s4565_s9 + $0x228] sm:$0xff] }
  0x2b   : > { %2532 = vmatpush.bf16.msra.mxu2 %v4202_v23  ;;  %v4232_v13 = vld [vmem:[%s4565_s9 + $0x180] sm:$0xff]  ;;  %v4271_v19 = vld [vmem:[%s4565_s9 + $0x2b8] sm:$0xff]  ;;  %v907_v21 = vpack.c.b16 %v875_v11, %v875_v11  ;;  %v908_v23 = vpack.c.b16 %v876_v15, %v876_v15  ;;  %v4261_v30 = vld [vmem:[%s4565_s9 + $0x268] sm:$0xff] }
  0x2c   : > { %2545 = vmatpush.bf16.msra.mxu3 %v4210_v24  ;;  %v4240_v14 = vld [vmem:[%s4565_s9 + $0x1c0] sm:$0xff]  ;;  %v4279_v20 = vld [vmem:[%s4565_s9 + $0x2f8] sm:$0xff]  ;;  %v905_v22 = vpack.c.b16 %v873_v12, %v873_v12  ;;  %v906_v24 = vpack.c.b16 %v874_v16, %v874_v16  ;;  %v4285_v7 = vld [vmem:[%s4565_s9 + $0x328] sm:$0xff] }
  0x2d   : > { %2507 = vmatpush.bf16.msra.mxu0 %v4185_v25  ;;  %v4254_v25 = vld [vmem:[%s4565_s9 + $0x230] sm:$0xff]  ;;  %v4252_v33 = vld [vmem:[%s4565_s9 + $0x220] sm:$0xff]  ;;  %v4251_v37 = vld [vmem:[%s4565_s9 + $0x218] sm:$0xff] }
  0x2e   : > { %2520 = vmatpush.bf16.msra.mxu1 %v4193_v26  ;;  %v4262_v26 = vld [vmem:[%s4565_s9 + $0x270] sm:$0xff]  ;;  %v4260_v34 = vld [vmem:[%s4565_s9 + $0x260] sm:$0xff]  ;;  %v4259_v38 = vld [vmem:[%s4565_s9 + $0x258] sm:$0xff] }
  0x2f   : > { %2533 = vmatpush.bf16.msra.mxu2 %v4201_v27  ;;  %v4270_v27 = vld [vmem:[%s4565_s9 + $0x2b0] sm:$0xff]  ;;  %v4293_v8 = vld [vmem:[%s4565_s9 + $0x368] sm:$0xff]  ;;  %v4284_v11 = vld [vmem:[%s4565_s9 + $0x320] sm:$0xff] }
  0x30   : > { %2546 = vmatpush.bf16.msra.mxu3 %v4209_v28  ;;  %v4278_v28 = vld [vmem:[%s4565_s9 + $0x2f0] sm:$0xff]  ;;  %v4292_v12 = vld [vmem:[%s4565_s9 + $0x360] sm:$0xff]  ;;  %v4283_v15 = vld [vmem:[%s4565_s9 + $0x318] sm:$0xff] }
  0x31   : > { %2508 = vmatpush.bf16.msra.mxu0 %v4184_v31  ;;  %v4269_v31 = vld [vmem:[%s4565_s9 + $0x2a8] sm:$0xff]  ;;  %v4291_v16 = vld [vmem:[%s4565_s9 + $0x358] sm:$0xff] }
  0x32   : > { %2521 = vmatpush.bf16.msra.mxu1 %v4192_v32  ;;  %v4277_v32 = vld [vmem:[%s4565_s9 + $0x2e8] sm:$0xff] }
  0x33   : > { %2534 = vmatpush.bf16.msra.mxu2 %v4200_v35  ;;  %v4268_v35 = vld [vmem:[%s4565_s9 + $0x2a0] sm:$0xff] }
  0x34   : > { %2547 = vmatpush.bf16.msra.mxu3 %v4208_v36  ;;  %2509 = vmatmul.bf16.vlgmr.msra.gmra.mxu0 %v901_v44  ;;  %v4276_v36 = vld [vmem:[%s4565_s9 + $0x2e0] sm:$0xff]  ;;  %v4274_v44 = vld [vmem:[%s4565_s9 + $0x2d0] sm:$0xff] }
  0x35   : > { %2553 = vmatpush.bf16.msrb.mxu0 %v4223_v39  ;;  %2522 = vmatmul.bf16.vlgmr.msra.gmra.mxu1 %v902_v46  ;;  %v4267_v39 = vld [vmem:[%s4565_s9 + $0x298] sm:$0xff]  ;;  %v4257_v46 = vld [vmem:[%s4565_s9 + $0x248] sm:$0xff] }
  0x36   : > { %2566 = vmatpush.bf16.msrb.mxu1 %v4231_v40  ;;  %2535 = vmatmul.bf16.vlgmr.msra.gmra.mxu2 %v903_v43  ;;  %v4275_v40 = vld [vmem:[%s4565_s9 + $0x2d8] sm:$0xff]  ;;  %v4266_v43 = vld [vmem:[%s4565_s9 + $0x290] sm:$0xff] }
  0x37   : > { %2579 = vmatpush.bf16.msrb.mxu2 %v4239_v41  ;;  %2548 = vmatmul.bf16.vlgmr.msra.gmra.mxu3 %v904_v45  ;;  %v4250_v41 = vld [vmem:[%s4565_s9 + $0x210] sm:$0xff]  ;;  %v4249_v45 = vld [vmem:[%s4565_s9 + $0x208] sm:$0xff] }
  0x38   : > { %2592 = vmatpush.bf16.msrb.mxu3 %v4247_v42  ;;  %v4258_v42 = vld [vmem:[%s4565_s9 + $0x250] sm:$0xff] }
  0x39   : > { %2554 = vmatpush.bf16.msrb.mxu0 %v4222_v47  ;;  %v4265_v47 = vld [vmem:[%s4565_s9 + $0x288] sm:$0xff] }
  0x3a   : > { %2567 = vmatpush.bf16.msrb.mxu1 %v4230_v48  ;;  %v4273_v48 = vld [vmem:[%s4565_s9 + $0x2c8] sm:$0xff] }
  0x3b   : > { %2580 = vmatpush.bf16.msrb.mxu2 %v4238_v49  ;;  %v324_v49 = vld [vmem:[%s4560_s30 + $0x20] sm:$0xff] }
  0x3c   : > { %2593 = vmatpush.bf16.msrb.mxu3 %v4246_v50  ;;  %v325_v50 = vld [vmem:[%s4560_s30 + $0x28] sm:$0xff] }
  0x3d   : > { %2555 = vmatpush.bf16.msrb.mxu0 %v4221_v51  ;;  %v4248_v51 = vld [vmem:[%s4565_s9 + $0x200] sm:$0xff] }
  0x3e   : > { %2568 = vmatpush.bf16.msrb.mxu1 %v4229_v52  ;;  %v4256_v52 = vld [vmem:[%s4565_s9 + $0x240] sm:$0xff] }
  0x3f   : > { %2581 = vmatpush.bf16.msrb.mxu2 %v4237_v53  ;;  %v877_v53 = vunpack.c.l.b16 %v324_v49 }
  0x40   : > { %2594 = vmatpush.bf16.msrb.mxu3 %v4245_v54  ;;  %v879_v54 = vunpack.c.l.b16 %v325_v50 }
  0x41   : > { %2556 = vmatpush.bf16.msrb.mxu0 %v4220_v55  ;;  %v4264_v55 = vld [vmem:[%s4565_s9 + $0x280] sm:$0xff] }
  0x42   : > { %2569 = vmatpush.bf16.msrb.mxu1 %v4228_v56  ;;  %v4272_v56 = vld [vmem:[%s4565_s9 + $0x2c0] sm:$0xff] }
  0x43   : > { %2582 = vmatpush.bf16.msrb.mxu2 %v4236_v57  ;;  %v878_v57 = vunpack.c.h.b16 %v324_v49  ;;  %v4317_v49 = vld [vmem:[%s4565_s9 + $0x428] sm:$0xff] }
  0x44   : > { %2595 = vmatpush.bf16.msrb.mxu3 %v4244_v58  ;;  %v880_v58 = vunpack.c.h.b16 %v325_v50  ;;  %v4325_v50 = vld [vmem:[%s4565_s9 + $0x468] sm:$0xff] }
  0x45   : > { %2557 = vmatpush.bf16.msrb.mxu0 %v4219_v59  ;;  %v4287_v59 = vld [vmem:[%s4565_s9 + $0x338] sm:$0xff] }
  0x46   : > { %2570 = vmatpush.bf16.msrb.mxu1 %v4227_v60  ;;  %v4295_v60 = vld [vmem:[%s4565_s9 + $0x378] sm:$0xff] }
  0x47   : > { %2583 = vmatpush.bf16.msrb.mxu2 %v4235_v61  ;;  %v4303_v61 = vld [vmem:[%s4565_s9 + $0x3b8] sm:$0xff] }
  0x48   : > { %2596 = vmatpush.bf16.msrb.mxu3 %v4243_v62  ;;  %v4311_v62 = vld [vmem:[%s4565_s9 + $0x3f8] sm:$0xff] }
  0x49   : > { %2558 = vmatpush.bf16.msrb.mxu0 %v4218_v63  ;;  %v909_v63 = vpack.c.b16 %v877_v53, %v877_v53  ;;  %v4316_v53 = vld [vmem:[%s4565_s9 + $0x420] sm:$0xff] }
  0x4a   : > { %2571 = vmatpush.bf16.msrb.mxu1 %v4226_v0  ;;  %v911_v0 = vpack.c.b16 %v879_v54, %v879_v54  ;;  %v4324_v54 = vld [vmem:[%s4565_s9 + $0x460] sm:$0xff] }
  0x4b   : > { %2584 = vmatpush.bf16.msrb.mxu2 %v4234_v1  ;;  %v910_v1 = vpack.c.b16 %v878_v57, %v878_v57  ;;  %v4315_v57 = vld [vmem:[%s4565_s9 + $0x418] sm:$0xff] }
  0x4c   : > { %2597 = vmatpush.bf16.msrb.mxu3 %v4242_v2  ;;  %v912_v2 = vpack.c.b16 %v880_v58, %v880_v58  ;;  %v4323_v58 = vld [vmem:[%s4565_s9 + $0x458] sm:$0xff] }
  0x4d   : > { %2559 = vmatpush.bf16.msrb.mxu0 %v4217_v3  ;;  %v4286_v3 = vld [vmem:[%s4565_s9 + $0x330] sm:$0xff] }
  0x4e   : > { %2572 = vmatpush.bf16.msrb.mxu1 %v4225_v4  ;;  %v4294_v4 = vld [vmem:[%s4565_s9 + $0x370] sm:$0xff] }
  0x4f   : > { %2585 = vmatpush.bf16.msrb.mxu2 %v4233_v5  ;;  %v4302_v5 = vld [vmem:[%s4565_s9 + $0x3b0] sm:$0xff] }
  0x50   : > { %2598 = vmatpush.bf16.msrb.mxu3 %v4241_v6  ;;  %v4310_v6 = vld [vmem:[%s4565_s9 + $0x3f0] sm:$0xff] }
  0x51   : > { %2560 = vmatpush.bf16.msrb.mxu0 %v4216_v9  ;;  %v4301_v9 = vld [vmem:[%s4565_s9 + $0x3a8] sm:$0xff] }
  0x52   : > { %2573 = vmatpush.bf16.msrb.mxu1 %v4224_v10  ;;  %v4309_v10 = vld [vmem:[%s4565_s9 + $0x3e8] sm:$0xff] }
  0x53   : > { %2586 = vmatpush.bf16.msrb.mxu2 %v4232_v13  ;;  %v4300_v13 = vld [vmem:[%s4565_s9 + $0x3a0] sm:$0xff] }
  0x54   : > { %2599 = vmatpush.bf16.msrb.mxu3 %v4240_v14  ;;  %2561 = vmatmul.bf16.vlgmr.msrb.gmra.mxu0 %v905_v22  ;;  %v4308_v14 = vld [vmem:[%s4565_s9 + $0x3e0] sm:$0xff]  ;;  %v4306_v22 = vld [vmem:[%s4565_s9 + $0x3d0] sm:$0xff] }
  0x55   : > { %2605 = vmatpush.bf16.msra.mxu0 %v4255_v17  ;;  %2574 = vmatmul.bf16.vlgmr.msrb.gmra.mxu1 %v906_v24  ;;  %v4299_v17 = vld [vmem:[%s4565_s9 + $0x398] sm:$0xff]  ;;  %v4289_v24 = vld [vmem:[%s4565_s9 + $0x348] sm:$0xff] }
  0x56   : > { %2618 = vmatpush.bf16.msra.mxu1 %v4263_v18  ;;  %2587 = vmatmul.bf16.vlgmr.msrb.gmra.mxu2 %v907_v21  ;;  %v4307_v18 = vld [vmem:[%s4565_s9 + $0x3d8] sm:$0xff]  ;;  %v4298_v21 = vld [vmem:[%s4565_s9 + $0x390] sm:$0xff] }
  0x57   : > { %2631 = vmatpush.bf16.msra.mxu2 %v4271_v19  ;;  %2600 = vmatmul.bf16.vlgmr.msrb.gmra.mxu3 %v908_v23  ;;  %v4282_v19 = vld [vmem:[%s4565_s9 + $0x310] sm:$0xff]  ;;  %v4281_v23 = vld [vmem:[%s4565_s9 + $0x308] sm:$0xff] }
  0x58   : > { %2644 = vmatpush.bf16.msra.mxu3 %v4279_v20  ;;  %v4290_v20 = vld [vmem:[%s4565_s9 + $0x350] sm:$0xff] }
  0x59   : > { %2606 = vmatpush.bf16.msra.mxu0 %v4254_v25  ;;  %v4297_v25 = vld [vmem:[%s4565_s9 + $0x388] sm:$0xff] }
  0x5a   : > { %2619 = vmatpush.bf16.msra.mxu1 %v4262_v26  ;;  %v4305_v26 = vld [vmem:[%s4565_s9 + $0x3c8] sm:$0xff] }
  0x5b   : > { %2632 = vmatpush.bf16.msra.mxu2 %v4270_v27  ;;  %v326_v27 = vld [vmem:[%s4560_s30 + $0x30] sm:$0xff] }
  0x5c   : > { %2645 = vmatpush.bf16.msra.mxu3 %v4278_v28  ;;  %v327_v28 = vld [vmem:[%s4560_s30 + $0x38] sm:$0xff] }
  0x5d   : > { %2607 = vmatpush.bf16.msra.mxu0 %v4253_v29  ;;  %v4280_v29 = vld [vmem:[%s4565_s9 + $0x300] sm:$0xff] }
  0x5e   : > { %2620 = vmatpush.bf16.msra.mxu1 %v4261_v30  ;;  %v4288_v30 = vld [vmem:[%s4565_s9 + $0x340] sm:$0xff] }
  0x5f   : > { %2633 = vmatpush.bf16.msra.mxu2 %v4269_v31  ;;  %v881_v31 = vunpack.c.l.b16 %v326_v27 }
  0x60   : > { %2646 = vmatpush.bf16.msra.mxu3 %v4277_v32  ;;  %v883_v32 = vunpack.c.l.b16 %v327_v28 }
  0x61   : > { %2608 = vmatpush.bf16.msra.mxu0 %v4252_v33  ;;  %v4296_v33 = vld [vmem:[%s4565_s9 + $0x380] sm:$0xff] }
  0x62   : > { %2621 = vmatpush.bf16.msra.mxu1 %v4260_v34  ;;  %v4304_v34 = vld [vmem:[%s4565_s9 + $0x3c0] sm:$0xff] }
  0x63   : > { %2634 = vmatpush.bf16.msra.mxu2 %v4268_v35  ;;  %v882_v35 = vunpack.c.h.b16 %v326_v27  ;;  %v4349_v27 = vld [vmem:[%s4565_s9 + $0x528] sm:$0xff] }
  0x64   : > { %2647 = vmatpush.bf16.msra.mxu3 %v4276_v36  ;;  %v884_v36 = vunpack.c.h.b16 %v327_v28  ;;  %v4357_v28 = vld [vmem:[%s4565_s9 + $0x568] sm:$0xff] }
  0x65   : > { %2609 = vmatpush.bf16.msra.mxu0 %v4251_v37  ;;  %v4319_v37 = vld [vmem:[%s4565_s9 + $0x438] sm:$0xff] }
  0x66   : > { %2622 = vmatpush.bf16.msra.mxu1 %v4259_v38  ;;  %v4327_v38 = vld [vmem:[%s4565_s9 + $0x478] sm:$0xff] }
  0x67   : > { %2635 = vmatpush.bf16.msra.mxu2 %v4267_v39  ;;  %v4335_v39 = vld [vmem:[%s4565_s9 + $0x4b8] sm:$0xff] }
  0x68   : > { %2648 = vmatpush.bf16.msra.mxu3 %v4275_v40  ;;  %v4343_v40 = vld [vmem:[%s4565_s9 + $0x4f8] sm:$0xff] }
  0x69   : > { %2610 = vmatpush.bf16.msra.mxu0 %v4250_v41  ;;  %v913_v41 = vpack.c.b16 %v881_v31, %v881_v31  ;;  %v4373_v31 = vld [vmem:[%s4565_s9 + $0x5e8] sm:$0xff] }
  0x6a   : > { %2623 = vmatpush.bf16.msra.mxu1 %v4258_v42  ;;  %v915_v42 = vpack.c.b16 %v883_v32, %v883_v32 }
  0x6b   : > { %2636 = vmatpush.bf16.msra.mxu2 %v4266_v43  ;;  %v914_v43 = vpack.c.b16 %v882_v35, %v882_v35 }
  0x6c   : > { %2649 = vmatpush.bf16.msra.mxu3 %v4274_v44  ;;  %v916_v44 = vpack.c.b16 %v884_v36, %v884_v36 }
  0x6d   : > { %2611 = vmatpush.bf16.msra.mxu0 %v4249_v45  ;;  %v4318_v45 = vld [vmem:[%s4565_s9 + $0x430] sm:$0xff] }
  0x6e   : > { %2624 = vmatpush.bf16.msra.mxu1 %v4257_v46  ;;  %v4326_v46 = vld [vmem:[%s4565_s9 + $0x470] sm:$0xff] }
  0x6f   : > { %2637 = vmatpush.bf16.msra.mxu2 %v4265_v47  ;;  %v4334_v47 = vld [vmem:[%s4565_s9 + $0x4b0] sm:$0xff] }
  0x70   : > { %2650 = vmatpush.bf16.msra.mxu3 %v4273_v48  ;;  %v4342_v48 = vld [vmem:[%s4565_s9 + $0x4f0] sm:$0xff] }
  0x71   : > { %2612 = vmatpush.bf16.msra.mxu0 %v4248_v51  ;;  %v4333_v51 = vld [vmem:[%s4565_s9 + $0x4a8] sm:$0xff] }
  0x72   : > { %2625 = vmatpush.bf16.msra.mxu1 %v4256_v52  ;;  %v4341_v52 = vld [vmem:[%s4565_s9 + $0x4e8] sm:$0xff] }
  0x73   : > { %2638 = vmatpush.bf16.msra.mxu2 %v4264_v55  ;;  %v4332_v55 = vld [vmem:[%s4565_s9 + $0x4a0] sm:$0xff] }
  0x74   : > { %2651 = vmatpush.bf16.msra.mxu3 %v4272_v56  ;;  %2613 = vmatmul.bf16.vlgmr.msra.gmra.mxu0 %v909_v63  ;;  %v4340_v56 = vld [vmem:[%s4565_s9 + $0x4e0] sm:$0xff]  ;;  %v4330_v63 = vld [vmem:[%s4565_s9 + $0x490] sm:$0xff] }
  0x75   : > { %2657 = vmatpush.bf16.msrb.mxu0 %v4287_v59  ;;  %2626 = vmatmul.bf16.vlgmr.msra.gmra.mxu1 %v910_v1  ;;  %v4331_v59 = vld [vmem:[%s4565_s9 + $0x498] sm:$0xff]  ;;  %v4313_v1 = vld [vmem:[%s4565_s9 + $0x408] sm:$0xff] }
  0x76   : > { %2670 = vmatpush.bf16.msrb.mxu1 %v4295_v60  ;;  %2639 = vmatmul.bf16.vlgmr.msra.gmra.mxu2 %v911_v0  ;;  %v4339_v60 = vld [vmem:[%s4565_s9 + $0x4d8] sm:$0xff]  ;;  %v4338_v0 = vld [vmem:[%s4565_s9 + $0x4d0] sm:$0xff] }
  0x77   : > { %2683 = vmatpush.bf16.msrb.mxu2 %v4303_v61  ;;  %2652 = vmatmul.bf16.vlgmr.msra.gmra.mxu3 %v912_v2  ;;  %v4314_v61 = vld [vmem:[%s4565_s9 + $0x410] sm:$0xff]  ;;  %v4321_v2 = vld [vmem:[%s4565_s9 + $0x448] sm:$0xff] }
  0x78   : > { %2696 = vmatpush.bf16.msrb.mxu3 %v4311_v62  ;;  %v4322_v62 = vld [vmem:[%s4565_s9 + $0x450] sm:$0xff] }
  0x79   : > { %2658 = vmatpush.bf16.msrb.mxu0 %v4286_v3  ;;  %v4329_v3 = vld [vmem:[%s4565_s9 + $0x488] sm:$0xff] }
  0x7a   : > { %2671 = vmatpush.bf16.msrb.mxu1 %v4294_v4  ;;  %v4337_v4 = vld [vmem:[%s4565_s9 + $0x4c8] sm:$0xff] }
  0x7b   : > { %2684 = vmatpush.bf16.msrb.mxu2 %v4302_v5  ;;  %v328_v5 = vld [vmem:[%s4560_s30 + $0x40] sm:$0xff] }
  0x7c   : > { %2697 = vmatpush.bf16.msrb.mxu3 %v4310_v6  ;;  %v329_v6 = vld [vmem:[%s4560_s30 + $0x48] sm:$0xff] }
  0x7d   : > { %2659 = vmatpush.bf16.msrb.mxu0 %v4285_v7  ;;  %v4312_v7 = vld [vmem:[%s4565_s9 + $0x400] sm:$0xff] }
  0x7e   : > { %2672 = vmatpush.bf16.msrb.mxu1 %v4293_v8  ;;  %v4320_v8 = vld [vmem:[%s4565_s9 + $0x440] sm:$0xff] }
  0x7f   : > { %2685 = vmatpush.bf16.msrb.mxu2 %v4301_v9  ;;  %v885_v9 = vunpack.c.l.b16 %v328_v5 }
  0x80   : > { %2698 = vmatpush.bf16.msrb.mxu3 %v4309_v10  ;;  %v887_v10 = vunpack.c.l.b16 %v329_v6 }
  0x81   : > { %2660 = vmatpush.bf16.msrb.mxu0 %v4284_v11  ;;  %v4328_v11 = vld [vmem:[%s4565_s9 + $0x480] sm:$0xff] }
  0x82   : > { %2673 = vmatpush.bf16.msrb.mxu1 %v4292_v12  ;;  %v4336_v12 = vld [vmem:[%s4565_s9 + $0x4c0] sm:$0xff] }
  0x83   : > { %2686 = vmatpush.bf16.msrb.mxu2 %v4300_v13  ;;  %v886_v13 = vunpack.c.h.b16 %v328_v5 }
  0x84   : > { %2699 = vmatpush.bf16.msrb.mxu3 %v4308_v14  ;;  %v888_v14 = vunpack.c.h.b16 %v329_v6  ;;  %v4383_v6 = vld [vmem:[%s4565_s9 + $0x638] sm:$0xff] }
  0x85   : > { %2661 = vmatpush.bf16.msrb.mxu0 %v4283_v15  ;;  %v4351_v15 = vld [vmem:[%s4565_s9 + $0x538] sm:$0xff] }
  0x86   : > { %2674 = vmatpush.bf16.msrb.mxu1 %v4291_v16  ;;  %v4359_v16 = vld [vmem:[%s4565_s9 + $0x578] sm:$0xff] }
  0x87   : > { %2687 = vmatpush.bf16.msrb.mxu2 %v4299_v17  ;;  %v4367_v17 = vld [vmem:[%s4565_s9 + $0x5b8] sm:$0xff] }
  0x88   : > { %2700 = vmatpush.bf16.msrb.mxu3 %v4307_v18  ;;  %v4375_v18 = vld [vmem:[%s4565_s9 + $0x5f8] sm:$0xff] }
  0x89   : > { %2662 = vmatpush.bf16.msrb.mxu0 %v4282_v19  ;;  %v917_v19 = vpack.c.b16 %v885_v9, %v885_v9  ;;  %v4407_v9 = vld [vmem:[%s4565_s9 + $0x6f8] sm:$0xff] }
  0x8a   : > { %2675 = vmatpush.bf16.msrb.mxu1 %v4290_v20  ;;  %v919_v20 = vpack.c.b16 %v887_v10, %v887_v10 }
  0x8b   : > { %2688 = vmatpush.bf16.msrb.mxu2 %v4298_v21  ;;  %v918_v21 = vpack.c.b16 %v886_v13, %v886_v13 }
  0x8c   : > { %2701 = vmatpush.bf16.msrb.mxu3 %v4306_v22  ;;  %v920_v22 = vpack.c.b16 %v888_v14, %v888_v14  ;;  %v4382_v14 = vld [vmem:[%s4565_s9 + $0x630] sm:$0xff] }
  0x8d   : > { %2663 = vmatpush.bf16.msrb.mxu0 %v4281_v23  ;;  %v4350_v23 = vld [vmem:[%s4565_s9 + $0x530] sm:$0xff] }
  0x8e   : > { %2676 = vmatpush.bf16.msrb.mxu1 %v4289_v24  ;;  %v4358_v24 = vld [vmem:[%s4565_s9 + $0x570] sm:$0xff] }
  0x8f   : > { %2689 = vmatpush.bf16.msrb.mxu2 %v4297_v25  ;;  %v4366_v25 = vld [vmem:[%s4565_s9 + $0x5b0] sm:$0xff] }
  0x90   : > { %2702 = vmatpush.bf16.msrb.mxu3 %v4305_v26  ;;  %v4374_v26 = vld [vmem:[%s4565_s9 + $0x5f0] sm:$0xff] }
  0x91   : > { %2664 = vmatpush.bf16.msrb.mxu0 %v4280_v29  ;;  %v4465_v29 = vld [vmem:[%s848_s16] ss:$0 sm:$0xff] }
  0x92   : > { %2677 = vmatpush.bf16.msrb.mxu1 %v4288_v30  ;;  %v4365_v30 = vld [vmem:[%s4565_s9 + $0x5a8] sm:$0xff] }
  0x93   : > { %2690 = vmatpush.bf16.msrb.mxu2 %v4296_v33  ;;  %v4348_v33 = vld [vmem:[%s4565_s9 + $0x520] sm:$0xff] }
  0x94   : > { %2703 = vmatpush.bf16.msrb.mxu3 %v4304_v34  ;;  %2665 = vmatmul.bf16.vlgmr.msrb.gmra.mxu0 %v913_v41  ;;  %v4356_v34 = vld [vmem:[%s4565_s9 + $0x560] sm:$0xff]  ;;  %v4355_v41 = vld [vmem:[%s4565_s9 + $0x558] sm:$0xff] }
  0x95   : > { %2709 = vmatpush.bf16.msra.mxu0 %v4319_v37  ;;  %2678 = vmatmul.bf16.vlgmr.msrb.gmra.mxu1 %v914_v43  ;;  %v4364_v37 = vld [vmem:[%s4565_s9 + $0x5a0] sm:$0xff]  ;;  %v4371_v43 = vld [vmem:[%s4565_s9 + $0x5d8] sm:$0xff] }
  0x96   : > { %2722 = vmatpush.bf16.msra.mxu1 %v4327_v38  ;;  %2691 = vmatmul.bf16.vlgmr.msrb.gmra.mxu2 %v915_v42  ;;  %v4372_v38 = vld [vmem:[%s4565_s9 + $0x5e0] sm:$0xff]  ;;  %v4363_v42 = vld [vmem:[%s4565_s9 + $0x598] sm:$0xff] }
  0x97   : > { %2735 = vmatpush.bf16.msra.mxu2 %v4335_v39  ;;  %2704 = vmatmul.bf16.vlgmr.msrb.gmra.mxu3 %v916_v44 }
  0x98   : > { %2748 = vmatpush.bf16.msra.mxu3 %v4343_v40  ;;  %v4347_v40 = vld [vmem:[%s4565_s9 + $0x518] sm:$0xff] }
  0x99   : > { %2710 = vmatpush.bf16.msra.mxu0 %v4318_v45 }
  0x9a   : > { %2723 = vmatpush.bf16.msra.mxu1 %v4326_v46 }
  0x9b   : > { %2736 = vmatpush.bf16.msra.mxu2 %v4334_v47 }
  0x9c   : > { %2749 = vmatpush.bf16.msra.mxu3 %v4342_v48  ;;  %v4346_v48 = vld [vmem:[%s4565_s9 + $0x510] sm:$0xff] }
  0x9d   : > { %2711 = vmatpush.bf16.msra.mxu0 %v4317_v49  ;;  %v4354_v49 = vld [vmem:[%s4565_s9 + $0x550] sm:$0xff] }
  0x9e   : > { %2724 = vmatpush.bf16.msra.mxu1 %v4325_v50 }
  0x9f   : > { %2737 = vmatpush.bf16.msra.mxu2 %v4333_v51 }
  0xa0   : > { %2750 = vmatpush.bf16.msra.mxu3 %v4341_v52  ;;  %v4362_v52 = vld [vmem:[%s4565_s9 + $0x590] sm:$0xff] }
  0xa1   : > { %2712 = vmatpush.bf16.msra.mxu0 %v4316_v53  ;;  %v4370_v53 = vld [vmem:[%s4565_s9 + $0x5d0] sm:$0xff] }
  0xa2   : > { %2725 = vmatpush.bf16.msra.mxu1 %v4324_v54  ;;  %v4345_v54 = vld [vmem:[%s4565_s9 + $0x508] sm:$0xff] }
  0xa3   : > { %2738 = vmatpush.bf16.msra.mxu2 %v4332_v55  ;;  %v4353_v55 = vld [vmem:[%s4565_s9 + $0x548] sm:$0xff] }
  0xa4   : > { %2751 = vmatpush.bf16.msra.mxu3 %v4340_v56  ;;  %v4361_v56 = vld [vmem:[%s4565_s9 + $0x588] sm:$0xff] }
  0xa5   : > { %2713 = vmatpush.bf16.msra.mxu0 %v4315_v57  ;;  %v4369_v57 = vld [vmem:[%s4565_s9 + $0x5c8] sm:$0xff] }
  0xa6   : > { %2726 = vmatpush.bf16.msra.mxu1 %v4323_v58  ;;  %v330_v58 = vld [vmem:[%s4560_s30 + $0x50] sm:$0xff] }
  0xa7   : > { %2739 = vmatpush.bf16.msra.mxu2 %v4331_v59  ;;  %v331_v59 = vld [vmem:[%s4560_s30 + $0x58] sm:$0xff] }
  0xa8   : > { %2752 = vmatpush.bf16.msra.mxu3 %v4339_v60  ;;  %v892_v5 = vunpack.c.h.b16 %v331_v59 }
  0xa9   : > { %2714 = vmatpush.bf16.msra.mxu0 %v4314_v61 }
  0xaa   : > { %2727 = vmatpush.bf16.msra.mxu1 %v4322_v62  ;;  %v4344_v62 = vld [vmem:[%s4565_s9 + $0x500] sm:$0xff]  ;;  %v924_v13 = vpack.c.b16 %v892_v5, %v892_v5  ;;  %v4422_v5 = vld [vmem:[%s4565_s9 + $0x770] sm:$0xff] }
  0xab   : > { %2740 = vmatpush.bf16.msra.mxu2 %v4330_v63  ;;  %v4352_v63 = vld [vmem:[%s4565_s9 + $0x540] sm:$0xff] }
  0xac   : > { %2753 = vmatpush.bf16.msra.mxu3 %v4338_v0  ;;  %v889_v0 = vunpack.c.l.b16 %v330_v58 }
  0xad   : > { %2715 = vmatpush.bf16.msra.mxu0 %v4313_v1  ;;  %v891_v1 = vunpack.c.l.b16 %v331_v59 }
  0xae   : > { %2728 = vmatpush.bf16.msra.mxu1 %v4321_v2  ;;  %v4360_v2 = vld [vmem:[%s4565_s9 + $0x580] sm:$0xff]  ;;  %v921_v10 = vpack.c.b16 %v889_v0, %v889_v0 }
  0xaf   : > { %2741 = vmatpush.bf16.msra.mxu2 %v4329_v3  ;;  %v4368_v3 = vld [vmem:[%s4565_s9 + $0x5c0] sm:$0xff] }
  0xb0   : > { %2754 = vmatpush.bf16.msra.mxu3 %v4337_v4  ;;  %v890_v4 = vunpack.c.h.b16 %v330_v58 }
  0xb1   : > { %2716 = vmatpush.bf16.msra.mxu0 %v4312_v7  ;;  %v2510_v32 = vpop.f32.mrf.mxu0  ;;  %v4391_v7 = vld [vmem:[%s4565_s9 + $0x678] sm:$0xff] }
  0xb2   : > { %2729 = vmatpush.bf16.msra.mxu1 %v4320_v8  ;;  %v2511_v35 = vadd.f32 %v4465_v29, %v2510_v32  ;;  %v2523_v36 = vpop.f32.mrf.mxu1  ;;  %v4399_v8 = vld [vmem:[%s4565_s9 + $0x6b8] sm:$0xff] }
  0xb3   : > { %2742 = vmatpush.bf16.msra.mxu2 %v4328_v11  ;;  %v923_v11 = vpack.c.b16 %v891_v1, %v891_v1  ;;  %v4395_v32 = vld [vmem:[%s4565_s9 + $0x698] sm:$0xff] }
  0xb4   : > { %2755 = vmatpush.bf16.msra.mxu3 %v4336_v12  ;;  %2717 = vmatmul.bf16.vlgmr.msra.gmra.mxu0 %v917_v19  ;;  %v2524_v39 = vadd.f32 %v2523_v36, %v2511_v35  ;;  %v922_v12 = vpack.c.b16 %v890_v4, %v890_v4  ;;  %v4389_v19 = vld [vmem:[%s4565_s9 + $0x668] sm:$0xff]  ;;  %v4414_v4 = vld [vmem:[%s4565_s9 + $0x730] sm:$0xff] }
  0xb5   : > { %2761 = vmatpush.bf16.msrb.mxu0 %v4351_v15  ;;  %2730 = vmatmul.bf16.vlgmr.msra.gmra.mxu1 %v918_v21  ;;  %v4390_v15 = vld [vmem:[%s4565_s9 + $0x670] sm:$0xff]  ;;  %v4405_v21 = vld [vmem:[%s4565_s9 + $0x6e8] sm:$0xff] }
  0xb6   : > { %2774 = vmatpush.bf16.msrb.mxu1 %v4359_v16  ;;  %2743 = vmatmul.bf16.vlgmr.msra.gmra.mxu2 %v919_v20  ;;  %v4398_v16 = vld [vmem:[%s4565_s9 + $0x6b0] sm:$0xff]  ;;  %v4397_v20 = vld [vmem:[%s4565_s9 + $0x6a8] sm:$0xff] }
  0xb7   : > { %2787 = vmatpush.bf16.msrb.mxu2 %v4367_v17  ;;  %2756 = vmatmul.bf16.vlgmr.msra.gmra.mxu3 %v920_v22  ;;  %v4406_v17 = vld [vmem:[%s4565_s9 + $0x6f0] sm:$0xff] }
  0xb8   : > { %2800 = vmatpush.bf16.msrb.mxu3 %v4375_v18  ;;  %v4381_v18 = vld [vmem:[%s4565_s9 + $0x628] sm:$0xff] }
  0xb9   : > { %2762 = vmatpush.bf16.msrb.mxu0 %v4350_v23  ;;  %v2536_v44 = vpop.f32.mrf.mxu2  ;;  %v2512_v47 = vpop.f32.mrf.mxu0  ;;  %v4380_v23 = vld [vmem:[%s4565_s9 + $0x620] sm:$0xff] }
  0xba   : > { %2775 = vmatpush.bf16.msrb.mxu1 %v4358_v24  ;;  %v2537_v45 = vadd.f32 %v2536_v44, %v2524_v39  ;;  %v2549_v46 = vpop.f32.mrf.mxu3  ;;  %v2525_v51 = vpop.f32.mrf.mxu1  ;;  %v4388_v24 = vld [vmem:[%s4565_s9 + $0x660] sm:$0xff]  ;;  %v4386_v39 = vld [vmem:[%s4565_s9 + $0x650] sm:$0xff]  ;;  %v4377_v44 = vld [vmem:[%s4565_s9 + $0x608] sm:$0xff] }
  0xbb   : > { %2788 = vmatpush.bf16.msrb.mxu2 %v4366_v25  ;;  %v4401_v47 = vld [vmem:[%s4565_s9 + $0x6c8] sm:$0xff] }
  0xbc   : > { %2801 = vmatpush.bf16.msrb.mxu3 %v4374_v26  ;;  %v4774_v50 = vadd.f32 %v2549_v46, %v2537_v45  ;;  %v4385_v45 = vld [vmem:[%s4565_s9 + $0x648] sm:$0xff] }
  0xbd   : > { %2763 = vmatpush.bf16.msrb.mxu0 %v4349_v27  ;;  %v4396_v27 = vld [vmem:[%s4565_s9 + $0x6a0] sm:$0xff]  ;;  %v4393_v46 = vld [vmem:[%s4565_s9 + $0x688] sm:$0xff] }
  0xbe   : > { %2776 = vmatpush.bf16.msrb.mxu1 %v4357_v28  ;;  %v4404_v28 = vld [vmem:[%s4565_s9 + $0x6e0] sm:$0xff] }
  0xbf   : > { %2789 = vmatpush.bf16.msrb.mxu2 %v4365_v30  ;;  %v4379_v30 = vld [vmem:[%s4565_s9 + $0x618] sm:$0xff] }
  0xc0   : > { %2802 = vmatpush.bf16.msrb.mxu3 %v4373_v31  ;;  %v4387_v31 = vld [vmem:[%s4565_s9 + $0x658] sm:$0xff] }
  0xc1   : > { %2764 = vmatpush.bf16.msrb.mxu0 %v4348_v33  ;;  %v2538_v60 = vpop.f32.mrf.mxu2  ;;  %v4403_v33 = vld [vmem:[%s4565_s9 + $0x6d8] sm:$0xff] }
  0xc2   : > { %2777 = vmatpush.bf16.msrb.mxu1 %v4356_v34  ;;  %v2551_v61 = vpop.f32.mrf.mxu3  ;;  %v4415_v60 = vld [vmem:[%s4565_s9 + $0x738] sm:$0xff] }
  0xc3   : > { %2790 = vmatpush.bf16.msrb.mxu2 %v4364_v37  ;;  %v4423_v61 = vld [vmem:[%s4565_s9 + $0x778] sm:$0xff] }
  0xc4   : > { %2803 = vmatpush.bf16.msrb.mxu3 %v4372_v38  ;;  %v4378_v38 = vld [vmem:[%s4565_s9 + $0x610] sm:$0xff] }
  0xc5   : > { %2765 = vmatpush.bf16.msrb.mxu0 %v4347_v40 }
  0xc6   : > { %2778 = vmatpush.bf16.msrb.mxu1 %v4355_v41 }
  0xc7   : > { %2791 = vmatpush.bf16.msrb.mxu2 %v4363_v42  ;;  %v4394_v42 = vld [vmem:[%s4565_s9 + $0x690] sm:$0xff] }
  0xc8   : > { %2804 = vmatpush.bf16.msrb.mxu3 %v4371_v43  ;;  %v4402_v43 = vld [vmem:[%s4565_s9 + $0x6d0] sm:$0xff] }
  0xc9   : > { %2766 = vmatpush.bf16.msrb.mxu0 %v4346_v48  ;;  %v332_v48 = vld [vmem:[%s4560_s30 + $0x60] sm:$0xff] }
  0xca   : > { %2779 = vmatpush.bf16.msrb.mxu1 %v4354_v49  ;;  %v333_v49 = vld [vmem:[%s4560_s30 + $0x68] sm:$0xff]  ;;  %v894_v58 = vunpack.c.h.b16 %v332_v48 }
  0xcb   : > { %2792 = vmatpush.bf16.msrb.mxu2 %v4362_v52  ;;  %v4376_v52 = vld [vmem:[%s4565_s9 + $0x600] sm:$0xff]  ;;  %v896_v59 = vunpack.c.h.b16 %v333_v49 }
  0xcc   : > { %2805 = vmatpush.bf16.msrb.mxu3 %v4370_v53  ;;  %v4384_v53 = vld [vmem:[%s4565_s9 + $0x640] sm:$0xff] }
  0xcd   : > { %2767 = vmatpush.bf16.msrb.mxu0 %v4345_v54  ;;  %v893_v54 = vunpack.c.l.b16 %v332_v48  ;;  %v4424_v48 = vld [vmem:[%s4565_s9 + $0x780] sm:$0xff] }
  0xce   : > { %2780 = vmatpush.bf16.msrb.mxu1 %v4353_v55  ;;  %v895_v55 = vunpack.c.l.b16 %v333_v49  ;;  %v4432_v49 = vld [vmem:[%s4565_s9 + $0x7c0] sm:$0xff] }
  0xcf   : > { %2793 = vmatpush.bf16.msrb.mxu2 %v4361_v56  ;;  %v4392_v56 = vld [vmem:[%s4565_s9 + $0x680] sm:$0xff]  ;;  %v925_v0 = vpack.c.b16 %v893_v54, %v893_v54 }
  0xd0   : > { %2806 = vmatpush.bf16.msrb.mxu3 %v4369_v57  ;;  %v4400_v57 = vld [vmem:[%s4565_s9 + $0x6c0] sm:$0xff]  ;;  %v927_v1 = vpack.c.b16 %v895_v55, %v895_v55 }
  0xd1   : > { %2768 = vmatpush.bf16.msrb.mxu0 %v4344_v62  ;;  %v2562_v22 = vpop.f32.mrf.mxu0  ;;  %v4431_v62 = vld [vmem:[%s4565_s9 + $0x7b8] sm:$0xff] }
  0xd2   : > { %2781 = vmatpush.bf16.msrb.mxu1 %v4352_v63  ;;  %v2563_v25 = vadd.f32 %v2562_v22, %v4774_v50  ;;  %v2575_v26 = vpop.f32.mrf.mxu1  ;;  %v4439_v63 = vld [vmem:[%s4565_s9 + $0x7f8] sm:$0xff] }
  0xd3   : > { %2794 = vmatpush.bf16.msrb.mxu2 %v4360_v2  ;;  %v926_v2 = vpack.c.b16 %v894_v58, %v894_v58  ;;  %v4427_v22 = vld [vmem:[%s4565_s9 + $0x798] sm:$0xff] }
  0xd4   : > { %2807 = vmatpush.bf16.msrb.mxu3 %v4368_v3  ;;  %2769 = vmatmul.bf16.vlgmr.msrb.gmra.mxu0 %v921_v10  ;;  %v2576_v29 = vadd.f32 %v2575_v26, %v2563_v25  ;;  %v928_v3 = vpack.c.b16 %v896_v59, %v896_v59  ;;  %v4429_v10 = vld [vmem:[%s4565_s9 + $0x7a8] sm:$0xff] }
  0xd5   : > { %2813 = vmatpush.bf16.msra.mxu0 %v4383_v6  ;;  %2782 = vmatmul.bf16.vlgmr.msrb.gmra.mxu1 %v922_v12  ;;  %v4430_v6 = vld [vmem:[%s4565_s9 + $0x7b0] sm:$0xff] }
  0xd6   : > { %2826 = vmatpush.bf16.msra.mxu1 %v4391_v7  ;;  %2795 = vmatmul.bf16.vlgmr.msrb.gmra.mxu2 %v923_v11  ;;  %v4438_v7 = vld [vmem:[%s4565_s9 + $0x7f0] sm:$0xff]  ;;  %v4437_v11 = vld [vmem:[%s4565_s9 + $0x7e8] sm:$0xff] }
  0xd7   : > { %2839 = vmatpush.bf16.msra.mxu2 %v4399_v8  ;;  %2808 = vmatmul.bf16.vlgmr.msrb.gmra.mxu3 %v924_v13  ;;  %v4413_v8 = vld [vmem:[%s4565_s9 + $0x728] sm:$0xff] }
  0xd8   : > { %2852 = vmatpush.bf16.msra.mxu3 %v4407_v9  ;;  %v4421_v9 = vld [vmem:[%s4565_s9 + $0x768] sm:$0xff] }
  0xd9   : > { %2814 = vmatpush.bf16.msra.mxu0 %v4382_v14  ;;  %v2588_v34 = vpop.f32.mrf.mxu2  ;;  %v2564_v37 = vpop.f32.mrf.mxu0  ;;  %v4412_v14 = vld [vmem:[%s4565_s9 + $0x720] sm:$0xff] }
  0xda   : > { %2827 = vmatpush.bf16.msra.mxu1 %v4390_v15  ;;  %v2589_v35 = vadd.f32 %v2588_v34, %v2576_v29  ;;  %v2601_v36 = vpop.f32.mrf.mxu3  ;;  %v2577_v41 = vpop.f32.mrf.mxu1  ;;  %v4420_v15 = vld [vmem:[%s4565_s9 + $0x760] sm:$0xff]  ;;  %v4410_v29 = vld [vmem:[%s4565_s9 + $0x710] sm:$0xff]  ;;  %v4409_v34 = vld [vmem:[%s4565_s9 + $0x708] sm:$0xff] }
  0xdb   : > { %2840 = vmatpush.bf16.msra.mxu2 %v4398_v16  ;;  %v4425_v37 = vld [vmem:[%s4565_s9 + $0x788] sm:$0xff] }
  0xdc   : > { %2853 = vmatpush.bf16.msra.mxu3 %v4406_v17  ;;  %v4811_v40 = vadd.f32 %v2601_v36, %v2589_v35  ;;  %v4428_v17 = vld [vmem:[%s4565_s9 + $0x7a0] sm:$0xff]  ;;  %v4417_v35 = vld [vmem:[%s4565_s9 + $0x748] sm:$0xff]  ;;  %v334_v36 = vld [vmem:[%s4560_s30 + $0x70] sm:$0xff] }
  0xdd   : > { %2815 = vmatpush.bf16.msra.mxu0 %v4381_v18  ;;  %v4436_v18 = vld [vmem:[%s4565_s9 + $0x7e0] sm:$0xff] }
  0xde   : > { %2828 = vmatpush.bf16.msra.mxu1 %v4389_v19 }
  0xdf   : > { %2841 = vmatpush.bf16.msra.mxu2 %v4397_v20  ;;  %v4411_v20 = vld [vmem:[%s4565_s9 + $0x718] sm:$0xff] }
  0xe0   : > { %2854 = vmatpush.bf16.msra.mxu3 %v4405_v21  ;;  %v4419_v21 = vld [vmem:[%s4565_s9 + $0x758] sm:$0xff] }
  0xe1   : > { %2816 = vmatpush.bf16.msra.mxu0 %v4380_v23  ;;  %v2590_v50 = vpop.f32.mrf.mxu2  ;;  %v4435_v23 = vld [vmem:[%s4565_s9 + $0x7d8] sm:$0xff] }
  0xe2   : > { %2829 = vmatpush.bf16.msra.mxu1 %v4388_v24  ;;  %v2603_v51 = vpop.f32.mrf.mxu3 }
  0xe3   : > { %2842 = vmatpush.bf16.msra.mxu2 %v4396_v27 }
  0xe4   : > { %2855 = vmatpush.bf16.msra.mxu3 %v4404_v28 }
  0xe5   : > { %2817 = vmatpush.bf16.msra.mxu0 %v4379_v30  ;;  %v4418_v30 = vld [vmem:[%s4565_s9 + $0x750] sm:$0xff] }
  0xe6   : > { %2830 = vmatpush.bf16.msra.mxu1 %v4387_v31 }
  0xe7   : > { %2843 = vmatpush.bf16.msra.mxu2 %v4395_v32  ;;  %v4426_v32 = vld [vmem:[%s4565_s9 + $0x790] sm:$0xff] }
  0xe8   : > { %2856 = vmatpush.bf16.msra.mxu3 %v4403_v33  ;;  %v4434_v33 = vld [vmem:[%s4565_s9 + $0x7d0] sm:$0xff] }
  0xe9   : > { %2818 = vmatpush.bf16.msra.mxu0 %v4378_v38  ;;  %v4433_v38 = vld [vmem:[%s4565_s9 + $0x7c8] sm:$0xff] }
  0xea   : > { %2831 = vmatpush.bf16.msra.mxu1 %v4386_v39  ;;  %v335_v39 = vld [vmem:[%s4560_s30 + $0x78] sm:$0xff] }
  0xeb   : > { %2844 = vmatpush.bf16.msra.mxu2 %v4394_v42  ;;  %v897_v42 = vunpack.c.l.b16 %v334_v36 }
  0xec   : > { %2857 = vmatpush.bf16.msra.mxu3 %v4402_v43  ;;  %v898_v43 = vunpack.c.h.b16 %v334_v36 }
  0xed   : > { %2819 = vmatpush.bf16.msra.mxu0 %v4377_v44  ;;  %v4408_v44 = vld [vmem:[%s4565_s9 + $0x700] sm:$0xff]  ;;  %v929_v50 = vpack.c.b16 %v897_v42, %v897_v42 }
  0xee   : > { %2832 = vmatpush.bf16.msra.mxu1 %v4385_v45  ;;  %v4416_v45 = vld [vmem:[%s4565_s9 + $0x740] sm:$0xff]  ;;  %v930_v51 = vpack.c.b16 %v898_v43, %v898_v43 }
  0xef   : > { %2845 = vmatpush.bf16.msra.mxu2 %v4393_v46  ;;  %v899_v46 = vunpack.c.l.b16 %v335_v39  ;;  %v2945_v42 = vld [vmem:[%s4864_s26] sm:$0xff] }
  0xf0   : > { %2858 = vmatpush.bf16.msra.mxu3 %v4401_v47  ;;  %v900_v47 = vunpack.c.h.b16 %v335_v39 }
  0xf1   : > { %2820 = vmatpush.bf16.msra.mxu0 %v4376_v52  ;;  %v2614_v12 = vpop.f32.mrf.mxu0  ;;  %v931_v52 = vpack.c.b16 %v899_v46, %v899_v46 }
  0xf2   : > { %2833 = vmatpush.bf16.msra.mxu1 %v4384_v53  ;;  %v2615_v13 = vadd.f32 %v2614_v12, %v4811_v40  ;;  %v2627_v16 = vpop.f32.mrf.mxu1  ;;  %v932_v53 = vpack.c.b16 %v900_v47, %v900_v47 }
  0xf3   : > { %2846 = vmatpush.bf16.msra.mxu2 %v4392_v56 }
  0xf4   : > { %2859 = vmatpush.bf16.msra.mxu3 %v4400_v57  ;;  %2821 = vmatmul.bf16.vlgmr.msra.gmra.mxu0 %v925_v0  ;;  %v2628_v19 = vadd.f32 %v2627_v16, %v2615_v13 }
  0xf5   : > { %2865 = vmatpush.bf16.msrb.mxu0 %v4415_v60  ;;  %2834 = vmatmul.bf16.vlgmr.msra.gmra.mxu1 %v926_v2 }
  0xf6   : > { %2878 = vmatpush.bf16.msrb.mxu1 %v4423_v61  ;;  %2847 = vmatmul.bf16.vlgmr.msra.gmra.mxu2 %v927_v1 }
  0xf7   : > { %2891 = vmatpush.bf16.msrb.mxu2 %v4431_v62  ;;  %2860 = vmatmul.bf16.vlgmr.msra.gmra.mxu3 %v928_v3 }
  0xf8   : > { %2904 = vmatpush.bf16.msrb.mxu3 %v4439_v63 }
  0xf9   : > { %2866 = vmatpush.bf16.msrb.mxu0 %v4414_v4  ;;  %v2640_v24 = vpop.f32.mrf.mxu2  ;;  %v2616_v27 = vpop.f32.mrf.mxu0 }
  0xfa   : > { %2879 = vmatpush.bf16.msrb.mxu1 %v4422_v5  ;;  %v2641_v25 = vadd.f32 %v2640_v24, %v2628_v19  ;;  %v2653_v26 = vpop.f32.mrf.mxu3  ;;  %v2629_v31 = vpop.f32.mrf.mxu1  ;;  %v2959_v19 = vld [vmem:[%s4864_s26 + $0x70] sm:$0xff]  ;;  %v2956_v24 = vld [vmem:[%s4864_s26 + $0x58] sm:$0xff] }
  0xfb   : > { %2892 = vmatpush.bf16.msrb.mxu2 %v4430_v6  ;;  %v2955_v27 = vld [vmem:[%s4864_s26 + $0x50] sm:$0xff] }
  0xfc   : > { %2905 = vmatpush.bf16.msrb.mxu3 %v4438_v7  ;;  %v2654_v28 = vadd.f32 %v2653_v26, %v2641_v25  ;;  %v2951_v31 = vld [vmem:[%s4864_s26 + $0x30] sm:$0xff] }
  0xfd   : > { %2867 = vmatpush.bf16.msrb.mxu0 %v4413_v8 }
  0xfe   : > { %2880 = vmatpush.bf16.msrb.mxu1 %v4421_v9 }
  0xff   : > { %2893 = vmatpush.bf16.msrb.mxu2 %v4429_v10 }
 0x100   : > { %2906 = vmatpush.bf16.msrb.mxu3 %v4437_v11 }
 0x101   : > { %2868 = vmatpush.bf16.msrb.mxu0 %v4412_v14  ;;  %v2642_v40 = vpop.f32.mrf.mxu2 }
 0x102   : > { %2881 = vmatpush.bf16.msrb.mxu1 %v4420_v15  ;;  %v2655_v41 = vpop.f32.mrf.mxu3 }
 0x103   : > { %2894 = vmatpush.bf16.msrb.mxu2 %v4428_v17 }
 0x104   : > { %2907 = vmatpush.bf16.msrb.mxu3 %v4436_v18  ;;  %v2960_v18 = vld [vmem:[%s4864_s26 + $0x78] sm:$0xff] }
 0x105   : > { %2869 = vmatpush.bf16.msrb.mxu0 %v4411_v20 }
 0x106   : > { %2882 = vmatpush.bf16.msrb.mxu1 %v4419_v21 }
 0x107   : > { %2895 = vmatpush.bf16.msrb.mxu2 %v4427_v22  ;;  %v2958_v22 = vld [vmem:[%s4864_s26 + $0x68] sm:$0xff] }
 0x108   : > { %2908 = vmatpush.bf16.msrb.mxu3 %v4435_v23  ;;  %v2957_v23 = vld [vmem:[%s4864_s26 + $0x60] sm:$0xff] }
 0x109   : > { %2870 = vmatpush.bf16.msrb.mxu0 %v4410_v29  ;;  %v2953_v29 = vld [vmem:[%s4864_s26 + $0x40] sm:$0xff] }
 0x10a   : > { %2883 = vmatpush.bf16.msrb.mxu1 %v4418_v30  ;;  %v2952_v30 = vld [vmem:[%s4864_s26 + $0x38] sm:$0xff] }
 0x10b   : > { %2896 = vmatpush.bf16.msrb.mxu2 %v4426_v32  ;;  %v2950_v32 = vld [vmem:[%s4864_s26 + $0x28] sm:$0xff] }
 0x10c   : > { %2909 = vmatpush.bf16.msrb.mxu3 %v4434_v33  ;;  %v2949_v33 = vld [vmem:[%s4864_s26 + $0x20] sm:$0xff] }
 0x10d   : > { %2871 = vmatpush.bf16.msrb.mxu0 %v4409_v34 }
 0x10e   : > { %2884 = vmatpush.bf16.msrb.mxu1 %v4417_v35  ;;  %v2948_v35 = vld [vmem:[%s4864_s26 + $0x18] sm:$0xff] }
 0x10f   : > { %2897 = vmatpush.bf16.msrb.mxu2 %v4425_v37  ;;  %v2947_v37 = vld [vmem:[%s4864_s26 + $0x10] sm:$0xff] }
 0x110   : > { %2910 = vmatpush.bf16.msrb.mxu3 %v4433_v38  ;;  %v2946_v38 = vld [vmem:[%s4864_s26 + $0x8] sm:$0xff] }
 0x111   : > { %2872 = vmatpush.bf16.msrb.mxu0 %v4408_v44  ;;  %v2666_v54 = vpop.f32.mrf.mxu0 }
 0x112   : > { %2885 = vmatpush.bf16.msrb.mxu1 %v4416_v45  ;;  %v2667_v55 = vadd.f32 %v2666_v54, %v2654_v28  ;;  %v2679_v56 = vpop.f32.mrf.mxu1  ;;  %v2954_v28 = vld [vmem:[%s4864_s26 + $0x48] sm:$0xff] }
 0x113   : > { %2898 = vmatpush.bf16.msrb.mxu2 %v4424_v48 }
 0x114   : > { %2911 = vmatpush.bf16.msrb.mxu3 %v4432_v49  ;;  %2873 = vmatmul.bf16.vlgmr.msrb.gmra.mxu0 %v929_v50  ;;  %v2680_v57 = vadd.f32 %v2679_v56, %v2667_v55 }
 0x115   : > { %2886 = vmatmul.bf16.vlgmr.msrb.gmra.mxu1 %v930_v51  ;;  %2961 = vmatpush.msra.mxu0 %v2960_v18 }
 0x116   : > { %2899 = vmatmul.bf16.vlgmr.msrb.gmra.mxu2 %v931_v52 }
 0x117   : > { %2912 = vmatmul.bf16.vlgmr.msrb.gmra.mxu3 %v932_v53  ;;  %2962 = vmatpush.msra.mxu0 %v2959_v19 }
 0x119   : > { %v2692_v58 = vpop.f32.mrf.mxu2  ;;  %v2668_v61 = vpop.f32.mrf.mxu0  ;;  %2963 = vmatpush.msra.mxu0 %v2958_v22 }
 0x11a   : > { %v2693_v59 = vadd.f32 %v2692_v58, %v2680_v57  ;;  %v2705_v60 = vpop.f32.mrf.mxu3  ;;  %v2681_v63 = vpop.f32.mrf.mxu1 }
 0x11b   : > { %2964 = vmatpush.msra.mxu0 %v2957_v23 }
 0x11c   : > { %v2706_v62 = vadd.f32 %v2705_v60, %v2693_v59 }
 0x11d   : > { %2965 = vmatpush.msra.mxu0 %v2956_v24 }
 0x11f   : > { %2966 = vmatpush.msra.mxu0 %v2955_v27 }
 0x121   : > { %v2694_v0 = vpop.f32.mrf.mxu2  ;;  %2967 = vmatpush.msra.mxu0 %v2954_v28 }
 0x122   : > { %v2707_v1 = vpop.f32.mrf.mxu3 }
 0x123   : > { %2968 = vmatpush.msra.mxu0 %v2953_v29 }
 0x125   : > { %2969 = vmatpush.msra.mxu0 %v2952_v30 }
 0x127   : > { %2970 = vmatpush.msra.mxu0 %v2951_v31 }
 0x129   : > { %2971 = vmatpush.msra.mxu0 %v2950_v32 }
 0x12b   : > { %2972 = vmatpush.msra.mxu0 %v2949_v33 }
 0x12d   : > { %2973 = vmatpush.msra.mxu0 %v2948_v35 }
 0x12f   : > { %2974 = vmatpush.msra.mxu0 %v2947_v37 }
 0x131   : > { %v2718_v2 = vpop.f32.mrf.mxu0  ;;  %2975 = vmatpush.msra.mxu0 %v2946_v38 }
 0x132   : > { %v2719_v3 = vadd.f32 %v2718_v2, %v2706_v62  ;;  %v2731_v4 = vpop.f32.mrf.mxu1 }
 0x133   : > { %2976 = vmatpush.msra.mxu0 %v2945_v42 }
 0x134   : > { %v2732_v5 = vadd.f32 %v2731_v4, %v2719_v3 }
 0x139   : > { %v2744_v6 = vpop.f32.mrf.mxu2  ;;  %v2720_v9 = vpop.f32.mrf.mxu0 }
 0x13a   : > { %v2745_v7 = vadd.f32 %v2744_v6, %v2732_v5  ;;  %v2757_v8 = vpop.f32.mrf.mxu3  ;;  %v2733_v11 = vpop.f32.mrf.mxu1  ;;  %v2942_v5 = vld [vmem:[#allocation2] sm:$0xff] }
 0x13c   : > { %v2758_v10 = vadd.f32 %v2757_v8, %v2745_v7 }
 0x141   : > { %v2746_v12 = vpop.f32.mrf.mxu2 }
 0x142   : > { %v2759_v13 = vpop.f32.mrf.mxu3 }
 0x151   : > { %v2770_v14 = vpop.f32.mrf.mxu0 }
 0x152   : > { %v2783_v15 = vpop.f32.mrf.mxu1  ;;  %v2771_v40 = vadd.f32 %v2770_v14, %v2758_v10 }
 0x154   : > { %v2784_v45 = vadd.f32 %v2783_v15, %v2771_v40 }
 0x159   : > { %v2796_v16 = vpop.f32.mrf.mxu2  ;;  %v2772_v20 = vpop.f32.mrf.mxu0 }
 0x15a   : > { %v2809_v17 = vpop.f32.mrf.mxu3  ;;  %v2785_v21 = vpop.f32.mrf.mxu1  ;;  %v2797_v46 = vadd.f32 %v2796_v16, %v2784_v45 }
 0x15c   : > { %v2810_v49 = vadd.f32 %v2809_v17, %v2797_v46 }
 0x161   : > { %v2798_v25 = vpop.f32.mrf.mxu2 }
 0x162   : > { %v2811_v26 = vpop.f32.mrf.mxu3 }
 0x171   : > { %v2822_v34 = vpop.f32.mrf.mxu0 }
 0x172   : > { %v2835_v36 = vpop.f32.mrf.mxu1  ;;  %v2823_v50 = vadd.f32 %v2822_v34, %v2810_v49 }
 0x174   : > { %v2836_v51 = vadd.f32 %v2835_v36, %v2823_v50 }
 0x179   : > { %v2848_v39 = vpop.f32.mrf.mxu2  ;;  %v2824_v43 = vpop.f32.mrf.mxu0 }
 0x17a   : > { %v2861_v41 = vpop.f32.mrf.mxu3  ;;  %v2837_v44 = vpop.f32.mrf.mxu1  ;;  %v2849_v52 = vadd.f32 %v2848_v39, %v2836_v51 }
 0x17c   : > { %v2862_v53 = vadd.f32 %v2861_v41, %v2849_v52 }
 0x181   : > { %v2850_v47 = vpop.f32.mrf.mxu2 }
 0x182   : > { %v2863_v48 = vpop.f32.mrf.mxu3 }
 0x191   : > { %v2874_v54 = vpop.f32.mrf.mxu0 }
 0x192   : > { %v2887_v55 = vpop.f32.mrf.mxu1  ;;  %v2875_v56 = vadd.f32 %v2874_v54, %v2862_v53 }
 0x194   : > { %v2888_v57 = vadd.f32 %v2887_v55, %v2875_v56 }
 0x199   : > { %v2900_v58 = vpop.f32.mrf.mxu2  ;;  %v2876_v61 = vpop.f32.mrf.mxu0 }
 0x19a   : > { %v2913_v59 = vpop.f32.mrf.mxu3  ;;  %v2901_v60 = vadd.f32 %v2900_v58, %v2888_v57  ;;  %v2889_v62 = vpop.f32.mrf.mxu1 }
 0x19c   : > { %v2914_v63 = vadd.f32 %v2913_v59, %v2901_v60 }
 0x19e   : > { %2917 = vmax.xlane.f32.xlu0 %v2914_v63  ;;  %2977 = vmatmul.f32.vlgmr.msra.gmra.mxu0 %v2914_v63 }
 0x1a1   : > { %v2902_v0 = vpop.f32.mrf.mxu2 }
 0x1a2   : > { %v2915_v1 = vpop.f32.mrf.mxu3 }
 0x211   : > { %v2918_v2 = vpop.xlane.xlu0 %2917 }
 0x212   : > { %v2919_v3 = vsub.f32 %v2914_v63, %v2918_v2 }
 0x214   : > { %v2920_v4 = vmul.f32 1.442695, %v2919_v3 }
 0x216   : > { %4466 = vpow2.f32 %v2920_v4 }
 0x21b   : > { %v2978_v6 = vpop.f32.mrf.mxu0 }
 0x21c   : > { %v4467_v7 = vpop.eup %4466  ;;  %v2981_v8 = vadd.f32 %v2978_v6, %v2942_v5 }
 0x21d   : > { %2922 = vadd.xlane.f32.xlu0 %v4467_v7 }
 0x21e   : > { %2982 = vst [vmem:[#allocation2] sm:$0xff] %v2981_v8 }
 0x290   : > { %v2923_v9 = vpop.xlane.xlu0 %2922 }
 0x291   : > { %4468 = vrcp.f32 %v2923_v9  ;;  %v2935_v13 = vand.u32 2147483648, %v2923_v9  ;;  %v2933_v15 = vand.u32 2147483647, %v2923_v9  ;;  %vm2929_vm1 = vweird.f32 %v2923_v9 }
 0x293   : > { %v2936_v17 = vor.u32 1.1754944e-38, %v2935_v13  ;;  %vm2934_vm3 = vcmp.eq.f32.partialorder %v2933_v15, 8.507059e+37 }
 0x297   : > { %v4469_v10 = vpop.eup %4468 }
 0x298   : > { %v2925_v11 = vmul.f32 %v4469_v10, %v2923_v9  ;;  %vm2930_vm0 = vweird.f32 %v4469_v10 }
 0x299   : > { %vm2931_vm2 = vmor %vm2929_vm1, %vm2930_vm0 }
 0x29a   : > { %v2926_v12 = vsub.f32 1.0, %v2925_v11 }
 0x29c   : > { %v2927_v14 = vmul.f32 %v4469_v10, %v2926_v12 }
 0x29e   : > { %v2928_v16 = vadd.f32 %v4469_v10, %v2927_v14 }
 0x2a0   : > { %v2932_v18 = vsel %vm2931_vm2, %v4469_v10, %v2928_v16 }
 0x2a1   : > { %v2937_v19 = vsel %vm2934_vm3, %v2936_v17, %v2932_v18 }
 0x2a2   : > { %v2938_v20 = vmul.f32 %v4467_v7, %v2937_v19 }
 0x2a4   : > { %v2939_v21 = vmax.f32 %v2938_v20, 1e-07  ;;  %2986 = sbr.rel (%p4178_p6) target bundleno = 952 (0x3b8), region = 48 }
 0x2a6   : > { %v2940_v22 = vmin.f32 %v2939_v21, 0.9999999 }
 0x2a8   : > { %2941 = vst [vmem:[%s4570_s13] sm:$0xff] %v2940_v22 }
 0x2a9   : > { %v2987_v23 = vld [vmem:[#allocation2] sm:$0xff] }
 0x2aa   : > { %v4470_v24 = vld [vmem:[%s4903_s4] ss:$0 sm:$0xff] }
 0x2ab   : > { %v2992_v25 = vadd.f32 %v4470_v24, %v2987_v23 }
 0x2ad   : > { %2993 = vmax.xlane.f32.xlu0 %v2992_v25 }
 0x320   : > { %v2994_v26 = vpop.xlane.xlu0 %2993 }
 0x321   : > { %v2995_v27 = vsub.f32 %v2992_v25, %v2994_v26 }
 0x323   : > { %v2996_v28 = vmul.f32 1.442695, %v2995_v27 }
 0x325   : > { %4471 = vpow2.f32 %v2996_v28 }
 0x32b   : > { %v4472_v29 = vpop.eup %4471 }
 0x32c   : > { %2998 = vadd.xlane.f32.xlu0 %v4472_v29 }
 0x39f   : > { %v2999_v30 = vpop.xlane.xlu0 %2998 }
 0x3a0   : > { %4473 = vrcp.f32 %v2999_v30  ;;  %v3011_v34 = vand.u32 2147483648, %v2999_v30  ;;  %v3009_v36 = vand.u32 2147483647, %v2999_v30  ;;  %vm3005_vm5 = vweird.f32 %v2999_v30 }
 0x3a2   : > { %v3012_v38 = vor.u32 1.1754944e-38, %v3011_v34  ;;  %vm3010_vm7 = vcmp.eq.f32.partialorder %v3009_v36, 8.507059e+37 }
 0x3a6   : > { %v4474_v31 = vpop.eup %4473 }
 0x3a7   : > { %v3001_v32 = vmul.f32 %v4474_v31, %v2999_v30  ;;  %vm3006_vm4 = vweird.f32 %v4474_v31 }
 0x3a8   : > { %vm3007_vm6 = vmor %vm3005_vm5, %vm3006_vm4 }
 0x3a9   : > { %v3002_v33 = vsub.f32 1.0, %v3001_v32 }
 0x3ab   : > { %v3003_v35 = vmul.f32 %v4474_v31, %v3002_v33 }
 0x3ad   : > { %v3004_v37 = vadd.f32 %v4474_v31, %v3003_v35 }
 0x3af   : > { %v3008_v39 = vsel %vm3007_vm6, %v4474_v31, %v3004_v37 }
 0x3b0   : > { %v3013_v40 = vsel %vm3010_vm7, %v3012_v38, %v3008_v39 }
 0x3b1   : > { %v3014_v41 = vmul.f32 %v4472_v29, %v3013_v40 }
 0x3b3   : > { %v3015_v42 = vmax.f32 %v3014_v41, 1e-07 }
 0x3b5   : > { %v3016_v43 = vmin.f32 %v3015_v42, 0.9999999 }
 0x3b7   : > { %3017 = vst [vmem:[%s4905_s6] sm:$0xff] %v3016_v43 }
 0x3b8 PF: > { %s17_s23 = sadd.s32 1, %s4497_s23   ;;  %s4906_s21 = smov %s4493_s22 }
 0x3b9   : > { %p14_p7 = scmp.ge.s32.totalorder %s17_s23, 4   ;;  %s4907_s22 = smov %s4909_s24 }
 0x3bb   :  { %16 = sbr.rel (!%p14_p7) target bundleno = 2 (0x2), region = 95 }

</bundles_post_ra>
